<compile_context>
chip_gen: v5e
topology: v5e:2x2
jax: 0.10.0
libtpu: 0.0.40
codegen_flags: <defaults>
</compile_context>

<pallas_src>
import functools
import math

import jax
import jax.numpy as jnp
from jax import lax
from jax.experimental import pallas as pl
from jax.experimental.pallas import tpu as pltpu


NUM_GROUPS = 32   # nn.GroupNorm(num_groups=32, ...)
EPS = 1e-5        # PyTorch GroupNorm default eps


# ----------------------------- kernel ---------------------------------------

def _attention_block_kernel(x_ref, gsel_ref, gamma_ref, beta_ref,
                            wqkv_ref, wproj_ref, bproj_ref, o_ref,
                            qkv_scr, attn_scr,
                            *, num_heads, q_tile, eps):
    C, L = x_ref.shape
    G = gsel_ref.shape[0]
    group_size = C // G
    head_dim = C // num_heads
    cdt = qkv_scr.dtype              # matmul operand dtype (bf16 fast / f32 exact)
    f32 = jnp.float32
    nq = L // q_tile

    # ---------------- GroupNorm(32, C, affine=True) ----------------
    x = x_ref[...].astype(f32)                                    # (C, L)
    s1 = jnp.sum(x, axis=1, keepdims=True)                        # (C, 1)
    s2 = jnp.sum(x * x, axis=1, keepdims=True)                    # (C, 1)
    g = gsel_ref[...]                                             # (G, C) one-hot
    inv_cnt = 1.0 / float(group_size * L)
    mean_g = jnp.dot(g, s1, preferred_element_type=f32) * inv_cnt  # (G, 1)
    ex2_g = jnp.dot(g, s2, preferred_element_type=f32) * inv_cnt   # (G, 1)
    # broadcast group stats back to channels: g^T @ stats  -> (C, 1)
    mean = lax.dot_general(g, mean_g, (((0,), (0,)), ((), ())),
                           preferred_element_type=f32)
    ex2 = lax.dot_general(g, ex2_g, (((0,), (0,)), ((), ())),
                          preferred_element_type=f32)
    var = jnp.maximum(ex2 - mean * mean, 0.0)
    inv = lax.rsqrt(var + eps)
    h = (x - mean) * (inv * gamma_ref[...]) + beta_ref[...]        # (C, L) f32

    # ---------------- qkv = Conv1d(C, 3C, 1, bias=False) == matmul ----------
    qkv = jnp.dot(wqkv_ref[...], h.astype(cdt),
                  preferred_element_type=f32)                      # (3C, L) f32
    qkv_scr[...] = qkv.astype(cdt)
    # x / h / qkv values die here; everything below reads the VMEM scratch.

    # ---------------- per-head attention, query-tiled ----------------
    scale = 1.0 / float(head_dim)     # (q/sqrt(hd)) . (k/sqrt(hd)) -> 1/hd total
    approx = cdt != jnp.float32
    aligned = (head_dim % 8) == 0

    def _rows(start):
        if aligned:
            start = pl.multiple_of(start, 8)
        return pl.ds(start, head_dim)

    for qi in range(nq):              # static loop: lane slices stay static
        q_lo = qi * q_tile
        q_sl = slice(q_lo, q_lo + q_tile)

        def head_body(n, carry):
            base = n * (3 * head_dim)                              # per-head [q|k|v]
            q_t = qkv_scr[_rows(base), q_sl]                       # (hd, TQ)
            k = qkv_scr[_rows(base + head_dim), :]                 # (hd, L)
            v = qkv_scr[_rows(base + 2 * head_dim), :]             # (hd, L)
            # logits[t, s] = scale * sum_c q[c, t] * k[c, s]
            logits = lax.dot_general(q_t * scale, k,
                                     (((0,), (0,)), ((), ())),
                                     preferred_element_type=f32)   # (TQ, L)
            m = jnp.max(logits, axis=-1, keepdims=True)
            p = jnp.exp(logits - m)
            denom = jnp.sum(p, axis=-1, keepdims=True)             # (TQ, 1)
            p = p * pl.reciprocal(denom, approx=approx)            # mult, not div
            # h_n[c, t] = sum_s v[c, s] * p[t, s]
            h_t = lax.dot_general(v, p.astype(cdt),
                                  (((1,), (1,)), ((), ())),
                                  preferred_element_type=f32)      # (hd, TQ)
            attn_scr[_rows(n * head_dim), q_sl] = h_t.astype(cdt)
            return carry

        lax.fori_loop(0, num_heads, head_body, 0)

    # ---------------- proj = Conv1d(C, C, 1) + residual ----------------
    out = jnp.dot(wproj_ref[...], attn_scr[...],
                  preferred_element_type=f32)                      # (C, L) f32
    out = out + bproj_ref[...] + x_ref[...].astype(f32)            # re-read residual
    o_ref[...] = out.astype(o_ref.dtype)


# ----------------------------- wrapper ---------------------------------------

def _pick_q_tile(L, target=256):
    """Largest query tile <= target that divides L (prefer multiples of 128)."""
    if L <= target:
        return L
    t = (target // 128) * 128
    while t >= 128:
        if L % t == 0:
            return t
        t -= 128
    for t in range(target, 0, -1):
        if L % t == 0:
            return t
    return L


def attention_block(x, gamma, beta, w_qkv, w_proj, b_proj, *, num_heads=1,
                    compute_dtype=jnp.bfloat16, q_tile=None):
    """AttentionBlock forward.

    x: (B, C, L); gamma/beta: (C,) GroupNorm affine; w_qkv: (3C, C);
    w_proj: (C, C); b_proj: (C,).  Returns (B, C, L).
    compute_dtype: MXU operand dtype (bf16 fast path / f32 exact path).
    """
    B, C, L = x.shape
    assert C % num_heads == 0, "channels must be divisible by num_heads"
    assert C % NUM_GROUPS == 0, "channels must be divisible by 32 (GroupNorm)"
    if q_tile is None:
        q_tile = _pick_q_tile(L)
    assert L % q_tile == 0, "q_tile must divide L"

    f32 = jnp.float32
    gs = C // NUM_GROUPS
    # (G, C) one-hot group-membership matrix (reduce + expand for GroupNorm stats).
    group_ids = jnp.arange(C) // gs
    gsel = (jnp.arange(NUM_GROUPS)[:, None] == group_ids[None, :]).astype(f32)

    kernel = functools.partial(_attention_block_kernel,
                               num_heads=num_heads, q_tile=q_tile, eps=EPS)

    return pl.pallas_call(
        kernel,
        out_shape=jax.ShapeDtypeStruct((B, C, L), x.dtype),
        grid=(B,),
        in_specs=[
            pl.BlockSpec((None, C, L), lambda b: (b, 0, 0)),        # x (per batch)
            pl.BlockSpec((NUM_GROUPS, C), lambda b: (0, 0)),        # group one-hot
            pl.BlockSpec((C, 1), lambda b: (0, 0)),                 # gamma
            pl.BlockSpec((C, 1), lambda b: (0, 0)),                 # beta
            pl.BlockSpec((3 * C, C), lambda b: (0, 0)),             # w_qkv (cdt)
            pl.BlockSpec((C, C), lambda b: (0, 0)),                 # w_proj (cdt)
            pl.BlockSpec((C, 1), lambda b: (0, 0)),                 # b_proj
        ],
        out_specs=pl.BlockSpec((None, C, L), lambda b: (b, 0, 0)),
        scratch_shapes=[
            pltpu.VMEM((3 * C, L), compute_dtype),                  # qkv scratch
            pltpu.VMEM((C, L), compute_dtype),                      # per-head output
        ],
        compiler_params=pltpu.CompilerParams(
            dimension_semantics=("parallel",),
            vmem_limit_bytes=64 * 1024 * 1024),
    )(x, gsel,
      gamma.astype(f32).reshape(C, 1), beta.astype(f32).reshape(C, 1),
      w_qkv.astype(compute_dtype), w_proj.astype(compute_dtype),
      b_proj.astype(f32).reshape(C, 1))


# ----------------------------- reference (module semantics) ------------------

def _attention_block_ref(x, gamma, beta, w_qkv, w_proj, b_proj, num_heads):
    B, C, L = x.shape
    gs = C // NUM_GROUPS
    xg = x.reshape(B, NUM_GROUPS, gs * L)
    mean = xg.mean(axis=-1, keepdims=True)
    var = xg.var(axis=-1, keepdims=True)                 # biased, like GroupNorm
    h = ((xg - mean) / jnp.sqrt(var + EPS)).reshape(B, C, L)
    h = h * gamma[None, :, None] + beta[None, :, None]
    qkv = jnp.einsum('oc,bcl->bol', w_qkv, h, precision='highest')  # (B, 3C, L)
    hd = C // num_heads
    qkv = qkv.reshape(B, num_heads, 3 * hd, L)
    q, k, v = qkv[:, :, :hd], qkv[:, :, hd:2 * hd], qkv[:, :, 2 * hd:]
    scale = 1.0 / math.sqrt(hd)
    attn = jnp.einsum('bncl,bncs->bnls', q * scale, k * scale, precision='highest')
    attn = jax.nn.softmax(attn, axis=-1)
    hat = jnp.einsum('bnls,bncs->bncl', attn, v, precision='highest').reshape(B, C, L)
    out = jnp.einsum('oc,bcl->bol', w_proj, hat, precision='highest') + b_proj[None, :, None]
    return out + x


# ----------------------------- main -------------------------------------------

if __name__ == "__main__":
    key = jax.random.PRNGKey(0)
    kx, kg, kb, kq, kp, kpb = jax.random.split(key, 6)

    # small but representative: C divisible by 32 and num_heads; L exercises
    # the multi-query-tile path via an explicit q_tile override.
    B, C, L = 2, 64, 32
    num_heads = 2

    x = jax.random.normal(kx, (B, C, L), dtype=jnp.float32)
    gamma = 1.0 + 0.1 * jax.random.normal(kg, (C,), dtype=jnp.float32)
    beta = 0.1 * jax.random.normal(kb, (C,), dtype=jnp.float32)
    w_qkv = 0.1 * jax.random.normal(kq, (3 * C, C), dtype=jnp.float32)
    w_proj = 0.1 * jax.random.normal(kp, (C, C), dtype=jnp.float32)
    b_proj = 0.1 * jax.random.normal(kpb, (C,), dtype=jnp.float32)

    ref = _attention_block_ref(x, gamma, beta, w_qkv, w_proj, b_proj, num_heads)

    # Exact path (f32 MXU operands), two query tiles (q_tile=16).
    y32 = attention_block(x, gamma, beta, w_qkv, w_proj, b_proj,
                          num_heads=num_heads, compute_dtype=jnp.float32, q_tile=16)
    y32 = jax.block_until_ready(y32)
    assert y32.shape == (B, C, L)
    err32 = float(jnp.max(jnp.abs(y32 - ref)))
    assert err32 < 2e-3, f"f32 path max abs err {err32}"

    # Fast path (bf16 MXU operands, f32 accumulation) — default configuration.
    ybf = attention_block(x, gamma, beta, w_qkv, w_proj, b_proj,
                          num_heads=num_heads)
    ybf = jax.block_until_ready(ybf)
    errbf = float(jnp.max(jnp.abs(ybf - ref)))
    assert errbf < 1e-1, f"bf16 path max abs err {errbf}"

    print("KERNEL_OK")
</pallas_src>

<mosaic_0001>
module attributes {stable_mosaic.version = 11 : i64} {
  func.func @_attention_block_kernel(%arg0: i32, %arg1: memref<1x64x32xf32, #tpu.memory_space<vmem>>, %arg2: memref<32x64xf32, #tpu.memory_space<vmem>>, %arg3: memref<64x1xf32, #tpu.memory_space<vmem>>, %arg4: memref<64x1xf32, #tpu.memory_space<vmem>>, %arg5: memref<192x64xf32, #tpu.memory_space<vmem>>, %arg6: memref<64x64xf32, #tpu.memory_space<vmem>>, %arg7: memref<64x1xf32, #tpu.memory_space<vmem>>, %arg8: memref<1x64x32xf32, #tpu.memory_space<vmem>>, %arg9: memref<192x32xf32, #tpu.memory_space<vmem>>, %arg10: memref<64x32xf32, #tpu.memory_space<vmem>>) attributes {dimension_semantics = [#tpu.dimension_semantics<parallel>], iteration_bounds = array<i64: 2>, scalar_prefetch = 0 : i64, scratch_operands = 2 : i64, tpu.core_type = #tpu.core_type<tc>, window_params = [{transform_indices = @transform_0, window_bounds = array<i64: 1, 64, 32>}, {pipeline_mode = #tpu.pipeline_mode<synchronous>, transform_indices = @transform_1, window_bounds = array<i64: 32, 64>}, {pipeline_mode = #tpu.pipeline_mode<synchronous>, transform_indices = @transform_2, window_bounds = array<i64: 64, 1>}, {pipeline_mode = #tpu.pipeline_mode<synchronous>, transform_indices = @transform_3, window_bounds = array<i64: 64, 1>}, {pipeline_mode = #tpu.pipeline_mode<synchronous>, transform_indices = @transform_4, window_bounds = array<i64: 192, 64>}, {pipeline_mode = #tpu.pipeline_mode<synchronous>, transform_indices = @transform_5, window_bounds = array<i64: 64, 64>}, {pipeline_mode = #tpu.pipeline_mode<synchronous>, transform_indices = @transform_6, window_bounds = array<i64: 64, 1>}, {transform_indices = @transform_7, window_bounds = array<i64: 1, 64, 32>}]} {
    %c0 = arith.constant 0 : index
    %c0_0 = arith.constant 0 : index
    %c0_1 = arith.constant 0 : index
    %0 = vector.load %arg1[%c0, %c0_0, %c0_1] : memref<1x64x32xf32, #tpu.memory_space<vmem>>, vector<1x64x32xf32>
    %1 = vector.shape_cast %0 : vector<1x64x32xf32> to vector<64x32xf32>
    %cst = arith.constant dense<0.000000e+00> : vector<64xf32>
    %2 = vector.multi_reduction <add>, %1, %cst [1] : vector<64x32xf32> to vector<64xf32>
    %3 = vector.shape_cast %2 : vector<64xf32> to vector<64x1xf32>
    %4 = arith.mulf %1, %1 : vector<64x32xf32>
    %cst_2 = arith.constant dense<0.000000e+00> : vector<64xf32>
    %5 = vector.multi_reduction <add>, %4, %cst_2 [1] : vector<64x32xf32> to vector<64xf32>
    %6 = vector.shape_cast %5 : vector<64xf32> to vector<64x1xf32>
    %c0_3 = arith.constant 0 : index
    %c0_4 = arith.constant 0 : index
    %7 = vector.load %arg2[%c0_3, %c0_4] : memref<32x64xf32, #tpu.memory_space<vmem>>, vector<32x64xf32>
    %cst_5 = arith.constant dense<0.000000e+00> : vector<32x1xf32>
    %8 = tpu.matmul %7, %3, %cst_5 {dimension_numbers = #tpu.dot_dimension_numbers<[1], [0], [0], [1], [0, 0, 1, 1], [], []>} : vector<32x64xf32>, vector<64x1xf32>, vector<32x1xf32> -> vector<32x1xf32>
    %cst_6 = arith.constant 1.562500e-02 : f32
    %9 = vector.broadcast %cst_6 : f32 to vector<32x1xf32>
    %10 = arith.mulf %8, %9 : vector<32x1xf32>
    %cst_7 = arith.constant dense<0.000000e+00> : vector<32x1xf32>
    %11 = tpu.matmul %7, %6, %cst_7 {dimension_numbers = #tpu.dot_dimension_numbers<[1], [0], [0], [1], [0, 0, 1, 1], [], []>} : vector<32x64xf32>, vector<64x1xf32>, vector<32x1xf32> -> vector<32x1xf32>
    %cst_8 = arith.constant 1.562500e-02 : f32
    %12 = vector.broadcast %cst_8 : f32 to vector<32x1xf32>
    %13 = arith.mulf %11, %12 : vector<32x1xf32>
    %cst_9 = arith.constant dense<0.000000e+00> : vector<64x1xf32>
    %14 = tpu.matmul %7, %10, %cst_9 {dimension_numbers = #tpu.dot_dimension_numbers<[0], [0], [1], [1], [0, 1, 1, 1], [], []>} : vector<32x64xf32>, vector<32x1xf32>, vector<64x1xf32> -> vector<64x1xf32>
    %cst_10 = arith.constant dense<0.000000e+00> : vector<64x1xf32>
    %15 = tpu.matmul %7, %13, %cst_10 {dimension_numbers = #tpu.dot_dimension_numbers<[0], [0], [1], [1], [0, 1, 1, 1], [], []>} : vector<32x64xf32>, vector<32x1xf32>, vector<64x1xf32> -> vector<64x1xf32>
    %16 = arith.mulf %14, %14 : vector<64x1xf32>
    %17 = arith.subf %15, %16 : vector<64x1xf32>
    %cst_11 = arith.constant 0.000000e+00 : f32
    %18 = vector.broadcast %cst_11 : f32 to vector<64x1xf32>
    %19 = arith.maximumf %17, %18 : vector<64x1xf32>
    %cst_12 = arith.constant 9.99999974E-6 : f32
    %20 = vector.broadcast %cst_12 : f32 to vector<64x1xf32>
    %21 = arith.addf %19, %20 : vector<64x1xf32>
    %22 = math.rsqrt %21 : vector<64x1xf32>
    %23 = vector.broadcast %14 : vector<64x1xf32> to vector<64x32xf32>
    %24 = arith.subf %1, %23 : vector<64x32xf32>
    %c0_13 = arith.constant 0 : index
    %c0_14 = arith.constant 0 : index
    %25 = vector.load %arg3[%c0_13, %c0_14] : memref<64x1xf32, #tpu.memory_space<vmem>>, vector<64x1xf32>
    %26 = arith.mulf %22, %25 : vector<64x1xf32>
    %27 = vector.broadcast %26 : vector<64x1xf32> to vector<64x32xf32>
    %28 = arith.mulf %24, %27 : vector<64x32xf32>
    %c0_15 = arith.constant 0 : index
    %c0_16 = arith.constant 0 : index
    %29 = vector.load %arg4[%c0_15, %c0_16] : memref<64x1xf32, #tpu.memory_space<vmem>>, vector<64x1xf32>
    %30 = vector.broadcast %29 : vector<64x1xf32> to vector<64x32xf32>
    %31 = arith.addf %28, %30 : vector<64x32xf32>
    %c0_17 = arith.constant 0 : index
    %c0_18 = arith.constant 0 : index
    %32 = vector.load %arg5[%c0_17, %c0_18] : memref<192x64xf32, #tpu.memory_space<vmem>>, vector<192x64xf32>
    %cst_19 = arith.constant dense<0.000000e+00> : vector<192x32xf32>
    %33 = tpu.matmul %32, %31, %cst_19 {dimension_numbers = #tpu.dot_dimension_numbers<[1], [0], [0], [1], [0, 0, 1, 1], [], []>} : vector<192x64xf32>, vector<64x32xf32>, vector<192x32xf32> -> vector<192x32xf32>
    %c0_20 = arith.constant 0 : index
    %c0_21 = arith.constant 0 : index
    %34 = vector.load %arg9[%c0_20, %c0_21] : memref<192x32xf32, #tpu.memory_space<vmem>>, vector<192x32xf32>
    tpu.vector_store %arg9[%c0_20, %c0_21], %33 {strides = array<i32>} : memref<192x32xf32, #tpu.memory_space<vmem>>, vector<192x32xf32>,
    %c0_i32 = arith.constant 0 : i32
    %c2_i32 = arith.constant 2 : i32
    %35 = arith.addi %c0_i32, %c2_i32 : i32
    %c1_i32 = arith.constant 1 : i32
    scf.for %arg11 = %c0_i32 to %35 step %c1_i32  : i32 {
      %c96_i32 = arith.constant 96 : i32
      %49 = arith.muli %arg11, %c96_i32 : i32
      %50 = tpu.assume_multiple %49, 8 : i32
      %51 = arith.index_cast %50 : i32 to index
      %c0_40 = arith.constant 0 : index
      %52 = vector.load %arg9[%51, %c0_40] : memref<192x32xf32, #tpu.memory_space<vmem>>, vector<32x16xf32>
      %c32_i32 = arith.constant 32 : i32
      %53 = arith.addi %49, %c32_i32 : i32
      %54 = tpu.assume_multiple %53, 8 : i32
      %55 = arith.index_cast %54 : i32 to index
      %c0_41 = arith.constant 0 : index
      %56 = vector.load %arg9[%55, %c0_41] : memref<192x32xf32, #tpu.memory_space<vmem>>, vector<32x32xf32>
      %c64_i32 = arith.constant 64 : i32
      %57 = arith.addi %49, %c64_i32 : i32
      %58 = tpu.assume_multiple %57, 8 : i32
      %59 = arith.index_cast %58 : i32 to index
      %c0_42 = arith.constant 0 : index
      %60 = vector.load %arg9[%59, %c0_42] : memref<192x32xf32, #tpu.memory_space<vmem>>, vector<32x32xf32>
      %cst_43 = arith.constant 3.125000e-02 : f32
      %61 = vector.broadcast %cst_43 : f32 to vector<32x16xf32>
      %62 = arith.mulf %52, %61 : vector<32x16xf32>
      %cst_44 = arith.constant dense<0.000000e+00> : vector<16x32xf32>
      %63 = tpu.matmul %62, %56, %cst_44 {dimension_numbers = #tpu.dot_dimension_numbers<[0], [0], [1], [1], [0, 1, 1, 1], [], []>} : vector<32x16xf32>, vector<32x32xf32>, vector<16x32xf32> -> vector<16x32xf32>
      %cst_45 = arith.constant dense<0xFF800000> : vector<16xf32>
      %64 = vector.multi_reduction <maximumf>, %63, %cst_45 [1] : vector<16x32xf32> to vector<16xf32>
      %65 = vector.shape_cast %64 : vector<16xf32> to vector<16x1xf32>
      %66 = vector.broadcast %65 : vector<16x1xf32> to vector<16x32xf32>
      %67 = arith.subf %63, %66 : vector<16x32xf32>
      %68 = math.exp %67 : vector<16x32xf32>
      %cst_46 = arith.constant dense<0.000000e+00> : vector<16xf32>
      %69 = vector.multi_reduction <add>, %68, %cst_46 [1] : vector<16x32xf32> to vector<16xf32>
      %70 = vector.shape_cast %69 : vector<16xf32> to vector<16x1xf32>
      %71 = tpu.reciprocal %70 : vector<16x1xf32> -> vector<16x1xf32>
      %72 = vector.broadcast %71 : vector<16x1xf32> to vector<16x32xf32>
      %73 = arith.mulf %68, %72 : vector<16x32xf32>
      %cst_47 = arith.constant dense<0.000000e+00> : vector<32x16xf32>
      %74 = tpu.matmul %60, %73, %cst_47 {dimension_numbers = #tpu.dot_dimension_numbers<[1], [1], [0], [0], [0, 0, 1, 0], [], []>} : vector<32x32xf32>, vector<16x32xf32>, vector<32x16xf32> -> vector<32x16xf32>
      %c32_i32_48 = arith.constant 32 : i32
      %75 = arith.muli %arg11, %c32_i32_48 : i32
      %76 = tpu.assume_multiple %75, 8 : i32
      %77 = arith.index_cast %76 : i32 to index
      %c0_49 = arith.constant 0 : index
      %78 = vector.load %arg10[%77, %c0_49] : memref<64x32xf32, #tpu.memory_space<vmem>>, vector<32x16xf32>
      tpu.vector_store %arg10[%77, %c0_49], %74 {strides = array<i32>} : memref<64x32xf32, #tpu.memory_space<vmem>>, vector<32x16xf32>,
    }
    %c2_i32_22 = arith.constant 2 : i32
    %c0_i32_23 = arith.constant 0 : i32
    %c2_i32_24 = arith.constant 2 : i32
    %36 = arith.addi %c0_i32_23, %c2_i32_24 : i32
    %c1_i32_25 = arith.constant 1 : i32
    scf.for %arg11 = %c0_i32_23 to %36 step %c1_i32_25  : i32 {
      %c96_i32 = arith.constant 96 : i32
      %49 = arith.muli %arg11, %c96_i32 : i32
      %50 = tpu.assume_multiple %49, 8 : i32
      %51 = arith.index_cast %50 : i32 to index
      %c16 = arith.constant 16 : index
      %52 = vector.load %arg9[%51, %c16] : memref<192x32xf32, #tpu.memory_space<vmem>>, vector<32x16xf32>
      %c32_i32 = arith.constant 32 : i32
      %53 = arith.addi %49, %c32_i32 : i32
      %54 = tpu.assume_multiple %53, 8 : i32
      %55 = arith.index_cast %54 : i32 to index
      %c0_40 = arith.constant 0 : index
      %56 = vector.load %arg9[%55, %c0_40] : memref<192x32xf32, #tpu.memory_space<vmem>>, vector<32x32xf32>
      %c64_i32 = arith.constant 64 : i32
      %57 = arith.addi %49, %c64_i32 : i32
      %58 = tpu.assume_multiple %57, 8 : i32
      %59 = arith.index_cast %58 : i32 to index
      %c0_41 = arith.constant 0 : index
      %60 = vector.load %arg9[%59, %c0_41] : memref<192x32xf32, #tpu.memory_space<vmem>>, vector<32x32xf32>
      %cst_42 = arith.constant 3.125000e-02 : f32
      %61 = vector.broadcast %cst_42 : f32 to vector<32x16xf32>
      %62 = arith.mulf %52, %61 : vector<32x16xf32>
      %cst_43 = arith.constant dense<0.000000e+00> : vector<16x32xf32>
      %63 = tpu.matmul %62, %56, %cst_43 {dimension_numbers = #tpu.dot_dimension_numbers<[0], [0], [1], [1], [0, 1, 1, 1], [], []>} : vector<32x16xf32>, vector<32x32xf32>, vector<16x32xf32> -> vector<16x32xf32>
      %cst_44 = arith.constant dense<0xFF800000> : vector<16xf32>
      %64 = vector.multi_reduction <maximumf>, %63, %cst_44 [1] : vector<16x32xf32> to vector<16xf32>
      %65 = vector.shape_cast %64 : vector<16xf32> to vector<16x1xf32>
      %66 = vector.broadcast %65 : vector<16x1xf32> to vector<16x32xf32>
      %67 = arith.subf %63, %66 : vector<16x32xf32>
      %68 = math.exp %67 : vector<16x32xf32>
      %cst_45 = arith.constant dense<0.000000e+00> : vector<16xf32>
      %69 = vector.multi_reduction <add>, %68, %cst_45 [1] : vector<16x32xf32> to vector<16xf32>
      %70 = vector.shape_cast %69 : vector<16xf32> to vector<16x1xf32>
      %71 = tpu.reciprocal %70 : vector<16x1xf32> -> vector<16x1xf32>
      %72 = vector.broadcast %71 : vector<16x1xf32> to vector<16x32xf32>
      %73 = arith.mulf %68, %72 : vector<16x32xf32>
      %cst_46 = arith.constant dense<0.000000e+00> : vector<32x16xf32>
      %74 = tpu.matmul %60, %73, %cst_46 {dimension_numbers = #tpu.dot_dimension_numbers<[1], [1], [0], [0], [0, 0, 1, 0], [], []>} : vector<32x32xf32>, vector<16x32xf32>, vector<32x16xf32> -> vector<32x16xf32>
      %c32_i32_47 = arith.constant 32 : i32
      %75 = arith.muli %arg11, %c32_i32_47 : i32
      %76 = tpu.assume_multiple %75, 8 : i32
      %77 = arith.index_cast %76 : i32 to index
      %c16_48 = arith.constant 16 : index
      %78 = vector.load %arg10[%77, %c16_48] : memref<64x32xf32, #tpu.memory_space<vmem>>, vector<32x16xf32>
      tpu.vector_store %arg10[%77, %c16_48], %74 {strides = array<i32>} : memref<64x32xf32, #tpu.memory_space<vmem>>, vector<32x16xf32>,
    }
    %c2_i32_26 = arith.constant 2 : i32
    %c0_27 = arith.constant 0 : index
    %c0_28 = arith.constant 0 : index
    %37 = vector.load %arg6[%c0_27, %c0_28] : memref<64x64xf32, #tpu.memory_space<vmem>>, vector<64x64xf32>
    %c0_29 = arith.constant 0 : index
    %c0_30 = arith.constant 0 : index
    %38 = vector.load %arg10[%c0_29, %c0_30] : memref<64x32xf32, #tpu.memory_space<vmem>>, vector<64x32xf32>
    %cst_31 = arith.constant dense<0.000000e+00> : vector<64x32xf32>
    %39 = tpu.matmul %37, %38, %cst_31 {dimension_numbers = #tpu.dot_dimension_numbers<[1], [0], [0], [1], [0, 0, 1, 1], [], []>} : vector<64x64xf32>, vector<64x32xf32>, vector<64x32xf32> -> vector<64x32xf32>
    %c0_32 = arith.constant 0 : index
    %c0_33 = arith.constant 0 : index
    %40 = vector.load %arg7[%c0_32, %c0_33] : memref<64x1xf32, #tpu.memory_space<vmem>>, vector<64x1xf32>
    %41 = vector.broadcast %40 : vector<64x1xf32> to vector<64x32xf32>
    %42 = arith.addf %39, %41 : vector<64x32xf32>
    %c0_34 = arith.constant 0 : index
    %c0_35 = arith.constant 0 : index
    %c0_36 = arith.constant 0 : index
    %43 = vector.load %arg1[%c0_34, %c0_35, %c0_36] : memref<1x64x32xf32, #tpu.memory_space<vmem>>, vector<1x64x32xf32>
    %44 = vector.shape_cast %43 : vector<1x64x32xf32> to vector<64x32xf32>
    %45 = arith.addf %42, %44 : vector<64x32xf32>
    %c0_37 = arith.constant 0 : index
    %c0_38 = arith.constant 0 : index
    %c0_39 = arith.constant 0 : index
    %46 = vector.load %arg8[%c0_37, %c0_38, %c0_39] : memref<1x64x32xf32, #tpu.memory_space<vmem>>, vector<1x64x32xf32>
    %47 = vector.shape_cast %46 : vector<1x64x32xf32> to vector<64x32xf32>
    %48 = vector.shape_cast %45 : vector<64x32xf32> to vector<1x64x32xf32>
    tpu.vector_store %arg8[%c0_37, %c0_38, %c0_39], %48 {strides = array<i32>} : memref<1x64x32xf32, #tpu.memory_space<vmem>>, vector<1x64x32xf32>,
    return
  }
  func.func @transform_0(%arg0: i32) -> (i32, i32, i32) {
    %c0_i32 = arith.constant 0 : i32
    %c0_i32_0 = arith.constant 0 : i32
    %c0_i32_1 = arith.constant 0 : i32
    return %arg0, %c0_i32, %c0_i32_0 : i32, i32, i32
  }
  func.func @transform_1(%arg0: i32) -> (i32, i32) {
    %c0_i32 = arith.constant 0 : i32
    %c0_i32_0 = arith.constant 0 : i32
    %c0_i32_1 = arith.constant 0 : i32
    return %c0_i32, %c0_i32_0 : i32, i32
  }
  func.func @transform_2(%arg0: i32) -> (i32, i32) {
    %c0_i32 = arith.constant 0 : i32
    %c0_i32_0 = arith.constant 0 : i32
    %c0_i32_1 = arith.constant 0 : i32
    return %c0_i32, %c0_i32_0 : i32, i32
  }
  func.func @transform_3(%arg0: i32) -> (i32, i32) {
    %c0_i32 = arith.constant 0 : i32
    %c0_i32_0 = arith.constant 0 : i32
    %c0_i32_1 = arith.constant 0 : i32
    return %c0_i32, %c0_i32_0 : i32, i32
  }
  func.func @transform_4(%arg0: i32) -> (i32, i32) {
    %c0_i32 = arith.constant 0 : i32
    %c0_i32_0 = arith.constant 0 : i32
    %c0_i32_1 = arith.constant 0 : i32
    return %c0_i32, %c0_i32_0 : i32, i32
  }
  func.func @transform_5(%arg0: i32) -> (i32, i32) {
    %c0_i32 = arith.constant 0 : i32
    %c0_i32_0 = arith.constant 0 : i32
    %c0_i32_1 = arith.constant 0 : i32
    return %c0_i32, %c0_i32_0 : i32, i32
  }
  func.func @transform_6(%arg0: i32) -> (i32, i32) {
    %c0_i32 = arith.constant 0 : i32
    %c0_i32_0 = arith.constant 0 : i32
    %c0_i32_1 = arith.constant 0 : i32
    return %c0_i32, %c0_i32_0 : i32, i32
  }
  func.func @transform_7(%arg0: i32) -> (i32, i32, i32) {
    %c0_i32 = arith.constant 0 : i32
    %c0_i32_0 = arith.constant 0 : i32
    %c0_i32_1 = arith.constant 0 : i32
    return %arg0, %c0_i32, %c0_i32_0 : i32, i32, i32
  }
}

</mosaic_0001>

<bundles_post_ra>
// kernel: tpu_custom_call.1
= control target key start
LH: loop header
LB: loop body
LE: loop exit
PB: predicated region body
PF: predicated region fallthrough
CT: control target
= control target key end

     0   :  { %s2000_s24 = smov 0   ;;  %s2488_s0 = inlined_call_operand.vmem [shape: f32[2,64,32], index: 0, kind: input, shape index: {}]   ;;  %s2489_s1 = inlined_call_operand.vmem [shape: f32[32,64], index: 1, kind: input, shape index: {}]   ;;  %s2490_s2 = inlined_call_operand.vmem [shape: f32[64,1], index: 2, kind: input, shape index: {}]   ;;  %s2491_s3 = inlined_call_operand.vmem [shape: f32[64,1], index: 3, kind: input, shape index: {}]   ;;  %s2492_s4 = inlined_call_operand.vmem [shape: f32[192,64], index: 4, kind: input, shape index: {}]   ;;  %s2493_s5 = inlined_call_operand.vmem [shape: f32[64,64], index: 5, kind: input, shape index: {}]   ;;  %s2494_s6 = inlined_call_operand.vmem [shape: f32[64,1], index: 6, kind: input, shape index: {}]   ;;  %s2495_s7 = inlined_call_operand.vmem [shape: f32[2,64,32], index: 7, kind: output, shape index: {}]  }
   0x1 LB: > { %s1706_s25 = sadd.s32 4294967295, %s1947_s24   ;;  %p1710_p0 = scmp.ge.s32.totalorder %s1947_s24, 1  ;;  %s1947_s24 = sphi %s2000_s24, %s17_s24  }
   0x2   : > { %p237_p1 = scmp.lt.s32.totalorder %s1947_s24, 3 }
   0x4   : > { %p238_p2 = pnand %p1710_p0, %p237_p1 }
   0x5   : > { %p269_p3 = scmp.lt.s32.totalorder (!%p238_p2), %s1706_s25, 1  ;;  %s2326_s18 = smov (!%p238_p2), 0  }
   0x6   : > { %241 = sbr.rel (%p238_p2) target bundleno = 2704 (0xa90), region = 48 }
   0xb   : > { %s2497_s25 = smov (!%p269_p3, %s1706_s25), 1  ;;  %vm287_vm0 = vcmask 261120   ;;  %v344_v32 = vld [vmem:[%s2489_s1] sm:$0xff]  ;;  %v345_v33 = vld [vmem:[%s2489_s1 + $0x8] sm:$0xff]  ;;  %v346_v34 = vld [vmem:[%s2489_s1 + $0x10] sm:$0xff]  ;;  %vm348_vm1 = vcmask 523264  }
   0xc   : > { %s1807_s26 = sshll.u32 %s2497_s25, 6  ;;  %v347_v35 = vld [vmem:[%s2489_s1 + $0x18] sm:$0xff] }
   0xd   : > { %s2011_s29 = scalar_lea.vmem %s2488_s0, %s1807_s26  ;;  %s2016_s9 = scalar_lea.vmem %s2495_s7, %s1807_s26 }
   0xe   : > { %v2019_v0 = vld [vmem:[%s2011_s29 + $0x38] sm:$0xff]  ;;  %v2022_v1 = vld [vmem:[%s2011_s29 + $0x28] sm:$0xff]  ;;  %v2034_v6 = vld [vmem:[%s2011_s29 + $0x30] sm:$0xff] }
   0xf   : > { %v2025_v2 = vld [vmem:[%s2011_s29 + $0x18] sm:$0xff]  ;;  %v309_v3 = vsel %vm287_vm0, %v2019_v0, 0.0  ;;  %v303_v4 = vsel %vm287_vm0, %v2022_v1, 0.0  ;;  %v2037_v7 = vld [vmem:[%s2011_s29 + $0x20] sm:$0xff]  ;;  %v2040_v8 = vld [vmem:[%s2011_s29 + $0x10] sm:$0xff]  ;;  %v306_v9 = vsel %vm287_vm0, %v2034_v6, 0.0  ;;  %v319_v14 = vmul.f32 %v2019_v0, %v2019_v0 }
  0x10   : > { %v297_v5 = vsel %vm287_vm0, %v2025_v2, 0.0  ;;  %310 = vadd.xlane.f32.xlu0 %v309_v3  ;;  %304 = vadd.xlane.f32.xlu1 %v303_v4  ;;  %v300_v10 = vsel %vm287_vm0, %v2037_v7, 0.0  ;;  %v294_v11 = vsel %vm287_vm0, %v2040_v8, 0.0  ;;  %v2049_v12 = vld [vmem:[%s2011_s29 + $0x8] sm:$0xff]  ;;  %v2052_v13 = vld [vmem:[%s2011_s29] sm:$0xff]  ;;  %v318_v18 = vmul.f32 %v2034_v6, %v2034_v6 }
  0x11   : > { %298 = vadd.xlane.f32.xlu2 %v297_v5  ;;  %v291_v15 = vsel %vm287_vm0, %v2049_v12, 0.0  ;;  %v288_v16 = vsel %vm287_vm0, %v2052_v13, 0.0  ;;  %v341_v17 = vsel %vm287_vm0, %v319_v14, 0.0  ;;  %v317_v19 = vmul.f32 %v2022_v1, %v2022_v1 }
  0x12   : > { %v316_v20 = vmul.f32 %v2037_v7, %v2037_v7  ;;  %v338_v21 = vsel %vm287_vm0, %v318_v18, 0.0  ;;  %v315_v24 = vmul.f32 %v2025_v2, %v2025_v2  ;;  %v314_v25 = vmul.f32 %v2040_v8, %v2040_v8 }
  0x13   : > { %v335_v22 = vsel %vm287_vm0, %v317_v19, 0.0  ;;  %v313_v26 = vmul.f32 %v2049_v12, %v2049_v12  ;;  %v312_v30 = vmul.f32 %v2052_v13, %v2052_v13 }
  0x14   : > { %v332_v23 = vsel %vm287_vm0, %v316_v20, 0.0  ;;  %v329_v27 = vsel %vm287_vm0, %v315_v24, 0.0  ;;  %v326_v28 = vsel %vm287_vm0, %v314_v25, 0.0  ;;  %v795_v20 = vld [vmem:[%s2491_s3 + $0x30] sm:$0xff]  ;;  %v794_v24 = vld [vmem:[%s2491_s3 + $0x28] sm:$0xff] }
  0x15   : > { %v323_v29 = vsel %vm287_vm0, %v313_v26, 0.0  ;;  %v320_v31 = vsel %vm287_vm0, %v312_v30, 0.0 }
  0x18   : > { %307 = vadd.xlane.f32.xlu0 %v306_v9  ;;  %301 = vadd.xlane.f32.xlu1 %v300_v10 }
  0x19   : > { %295 = vadd.xlane.f32.xlu2 %v294_v11 }
  0x20   : > { %292 = vadd.xlane.f32.xlu0 %v291_v15  ;;  %289 = vadd.xlane.f32.xlu1 %v288_v16 }
  0x21   : > { %342 = vadd.xlane.f32.xlu2 %v341_v17 }
  0x28   : > { %339 = vadd.xlane.f32.xlu0 %v338_v21  ;;  %336 = vadd.xlane.f32.xlu1 %v335_v22  ;;  %v796_v21 = vld [vmem:[%s2491_s3 + $0x38] sm:$0xff]  ;;  %v1957_v22 = vmov 0  }
  0x29   : > { %333 = vadd.xlane.f32.xlu2 %v332_v23  ;;  %1895 = vset.pattern.permute.xlu0 %v1957_v22  ;;  %v793_v23 = vld [vmem:[%s2491_s3 + $0x20] sm:$0xff] }
  0x2a   : > { %1896 = vset.pattern.permute.xlu2 %v1957_v22 }
  0x30   : > { %330 = vadd.xlane.f32.xlu0 %v329_v27  ;;  %327 = vadd.xlane.f32.xlu1 %v326_v28  ;;  %v792_v27 = vld [vmem:[%s2491_s3 + $0x18] sm:$0xff] }
  0x31   : > { %324 = vadd.xlane.f32.xlu2 %v323_v29 }
  0x38   : > { %321 = vadd.xlane.f32.xlu0 %v320_v31 }
  0x49   : > { %829 = vperm.xlu2 %1896, %v795_v20  }
  0x4c   : > { %834 = vperm.xlu0 %1895, %v796_v21  }
  0x51   : > { %819 = vperm.xlu2 %1896, %v793_v23  }
  0x54   : > { %824 = vperm.xlu0 %1895, %v794_v24  }
  0x6a   : > { %427 = vxpose.xlu1.b32.start [1/4] (short) (narrow) %v344_v32, 64 }
  0x72   : > { %428 = vxpose.xlu1.b32.cont [2/4] (short) (narrow) %v345_v33, 64 }
  0x7a   : > { %429 = vxpose.xlu1.b32.cont [3/4] (short) (narrow) %v346_v34, 64 }
  0x82   : > { %430 = vxpose.xlu1.b32.end [4/4] (short) (narrow) %v347_v35, 64 }
  0x83   : > { %v311_v36 = vpop.xlane.xlu0 %310  ;;  %v305_v37 = vpop.xlane.xlu1 %304 }
  0x84   : > { %369 = vmatpush.msra.mxu0 %v311_v36  ;;  %v299_v38 = vpop.xlane.xlu2 %298 }
  0x8b   : > { %v308_v39 = vpop.xlane.xlu0 %307  ;;  %v302_v40 = vpop.xlane.xlu1 %301 }
  0x8c   : > { %370 = vmatpush.msra.mxu0 %v308_v39  ;;  %v296_v41 = vpop.xlane.xlu2 %295 }
  0x8e   : > { %371 = vmatpush.msra.mxu0 %v305_v37 }
  0x90   : > { %372 = vmatpush.msra.mxu0 %v302_v40 }
  0x92   : > { %373 = vmatpush.msra.mxu0 %v299_v38 }
  0x93   : > { %v293_v42 = vpop.xlane.xlu0 %292  ;;  %v290_v43 = vpop.xlane.xlu1 %289 }
  0x94   : > { %374 = vmatpush.msra.mxu0 %v296_v41  ;;  %v343_v44 = vpop.xlane.xlu2 %342 }
  0x95   : > { %402 = vmatpush.msra.mxu1 %v343_v44 }
  0x96   : > { %375 = vmatpush.msra.mxu0 %v293_v42 }
  0x98   : > { %376 = vmatpush.msra.mxu0 %v290_v43 }
  0x99   : > { %1715 = vmatmul.msk.f32.vlgmr.msra.gmra.mxu0 %vm348_vm1, %v344_v32 }
  0x9b   : > { %v340_v45 = vpop.xlane.xlu0 %339  ;;  %v337_v46 = vpop.xlane.xlu1 %336 }
  0x9c   : > { %403 = vmatpush.msra.mxu1 %v340_v45  ;;  %v334_v47 = vpop.xlane.xlu2 %333 }
  0x9e   : > { %404 = vmatpush.msra.mxu1 %v337_v46 }
  0xa0   : > { %405 = vmatpush.msra.mxu1 %v334_v47 }
  0xa1   : > { %1716 = vmatmul.msk.f32.gmra.mxu0 %vm348_vm1, %v345_v33 }
  0xa3   : > { %v331_v48 = vpop.xlane.xlu0 %330  ;;  %v328_v49 = vpop.xlane.xlu1 %327 }
  0xa4   : > { %406 = vmatpush.msra.mxu1 %v331_v48  ;;  %v325_v50 = vpop.xlane.xlu2 %324 }
  0xa6   : > { %407 = vmatpush.msra.mxu1 %v328_v49 }
  0xa8   : > { %408 = vmatpush.msra.mxu1 %v325_v50 }
  0xa9   : > { %1717 = vmatmul.msk.f32.gmra.mxu0 %vm348_vm1, %v346_v34 }
  0xab   : > { %v322_v51 = vpop.xlane.xlu0 %321 }
  0xac   : > { %409 = vmatpush.msra.mxu1 %v322_v51 }
  0xad   : > { %1719 = vmatmul.msk.f32.vlgmr.msra.gmra.mxu1 %vm348_vm1, %v344_v32 }
  0xb1   : > { %1718 = vmatmul.msk.f32.gmra.mxu0 %vm348_vm1, %v347_v35 }
  0xb5   : > { %1720 = vmatmul.msk.f32.gmra.mxu1 %vm348_vm1, %v345_v33 }
  0xbd   : > { %1721 = vmatmul.msk.f32.gmra.mxu1 %vm348_vm1, %v346_v34 }
  0xc5   : > { %1722 = vmatmul.msk.f32.gmra.mxu1 %vm348_vm1, %v347_v35 }
  0xd5   : > { %1897 = vset.pattern.permute.xlu1 %v1957_v22 }
 0x10e   : > { %v443_v52 = vpop.trf.xlu1 }
 0x116   : > { %v378_v53 = vpop.f32.mrf.mxu0  ;;  %v444_v54 = vpop.trf.xlu1 }
 0x117   : > { %v390_v5 = vmul.f32 0.015625, %v378_v53 }
 0x11e   : > { %v381_v55 = vpop.f32.mrf.mxu0  ;;  %v445_v56 = vpop.trf.xlu1 }
 0x11f   : > { %v391_v4 = vmul.f32 0.015625, %v381_v55 }
 0x126   : > { %v384_v57 = vpop.f32.mrf.mxu0  ;;  %v446_v58 = vpop.trf.xlu1 }
 0x127   : > { %v392_v63 = vmul.f32 0.015625, %v384_v57 }
 0x12a   : > { %v411_v59 = vpop.f32.mrf.mxu1 }
 0x12b   : > { %v423_v19 = vmul.f32 0.015625, %v411_v59 }
 0x12e   : > { %v387_v60 = vpop.f32.mrf.mxu0  ;;  %v447_v61 = vpop.trf.xlu1 }
 0x12f   : > { %v393_v62 = vmul.f32 0.015625, %v387_v60  ;;  %v726_v60 = vld [vmem:[%s2490_s2 + $0x8] sm:$0xff] }
 0x131   : > { %495 = vmatpush.msra.mxu2 %v393_v62  ;;  %1809 = vmatpush.msra.mxu3 %v393_v62 }
 0x132   : > { %v414_v3 = vpop.f32.mrf.mxu1 }
 0x133   : > { %496 = vmatpush.msra.mxu2 %v392_v63  ;;  %1810 = vmatpush.msra.mxu3 %v392_v63  ;;  %v424_v18 = vmul.f32 0.015625, %v414_v3 }
 0x135   : > { %497 = vmatpush.msra.mxu2 %v391_v4  ;;  %1811 = vmatpush.msra.mxu3 %v391_v4 }
 0x136   : > { %v448_v9 = vpop.trf.xlu1 }
 0x137   : > { %498 = vmatpush.msra.mxu2 %v390_v5  ;;  %1812 = vmatpush.msra.mxu3 %v390_v5 }
 0x138   : > { %1723 = vmatmul.msk.f32.vlgmr.msra.gmra.mxu2 %vm287_vm0, %v443_v52  ;;  %1728 = vmatmul.msk.f32.vlgmr.msra.gmra.mxu3 %vm287_vm0, %v448_v9 }
 0x13a   : > { %v417_v10 = vpop.f32.mrf.mxu1 }
 0x13b   : > { %v425_v16 = vmul.f32 0.015625, %v417_v10 }
 0x13e   : > { %v449_v11 = vpop.trf.xlu1 }
 0x140   : > { %1724 = vmatmul.msk.f32.gmra.mxu2 %vm287_vm0, %v444_v54  ;;  %1729 = vmatmul.msk.f32.gmra.mxu3 %vm287_vm0, %v449_v11 }
 0x142   : > { %v420_v14 = vpop.f32.mrf.mxu1 }
 0x143   : > { %v426_v15 = vmul.f32 0.015625, %v420_v14 }
 0x145   : > { %536 = vmatpush.msrb.mxu3 %v426_v15 }
 0x146   : > { %v450_v17 = vpop.trf.xlu1 }
 0x147   : > { %537 = vmatpush.msrb.mxu3 %v425_v16 }
 0x148   : > { %1725 = vmatmul.msk.f32.gmra.mxu2 %vm287_vm0, %v445_v56  ;;  %1730 = vmatmul.msk.f32.gmra.mxu3 %vm287_vm0, %v450_v17 }
 0x149   : > { %538 = vmatpush.msrb.mxu3 %v424_v18  ;;  %v727_v18 = vld [vmem:[%s2490_s2 + $0x10] sm:$0xff] }
 0x14b   : > { %539 = vmatpush.msrb.mxu3 %v423_v19 }
 0x150   : > { %1726 = vmatmul.msk.f32.gmra.mxu2 %vm287_vm0, %v446_v58  ;;  %1731 = vmatmul.msk.f32.vlgmr.msrb.gmra.mxu3 %vm287_vm0, %v443_v52 }
 0x158   : > { %1727 = vmatmul.msk.f32.gmra.mxu2 %vm287_vm0, %v447_v61  ;;  %1732 = vmatmul.msk.f32.gmra.mxu3 %vm287_vm0, %v444_v54 }
 0x160   : > { %1733 = vmatmul.msk.f32.gmra.mxu3 %vm287_vm0, %v445_v56 }
 0x168   : > { %1734 = vmatmul.msk.f32.gmra.mxu3 %vm287_vm0, %v446_v58 }
 0x170   : > { %1735 = vmatmul.msk.f32.gmra.mxu3 %vm287_vm0, %v447_v61 }
 0x178   : > { %1736 = vmatmul.msk.f32.gmra.mxu3 %vm287_vm0, %v448_v9 }
 0x180   : > { %1737 = vmatmul.msk.f32.gmra.mxu3 %vm287_vm0, %v449_v11 }
 0x188   : > { %1738 = vmatmul.msk.f32.gmra.mxu3 %vm287_vm0, %v450_v17 }
 0x1bb   : > { %v500_v25 = vpop.f32.mrf.mxu2  ;;  %v2133_v26 = vpop.f32.mrf.mxu3 }
 0x1bc   : > { %704 = vperm.xlu2 %1896, %v2133_v26   ;;  %v2145_v32 = vmul.f32 %v500_v25, %v500_v25  ;;  %v570_v19 = vmul.f32 %v2133_v26, %v2133_v26  ;;  %v728_v26 = vld [vmem:[%s2490_s2 + $0x18] sm:$0xff] }
 0x1c3   : > { %v503_v28 = vpop.f32.mrf.mxu2  ;;  %v2139_v29 = vpop.f32.mrf.mxu3 }
 0x1c4   : > { %684 = vperm.xlu1 %1897, %v503_v28   ;;  %814 = vperm.xlu2 %1896, %v792_v27   ;;  %v566_v36 = vmul.f32 %v503_v28, %v503_v28 }
 0x1c5   : > { %709 = vperm.xlu0 %1895, %v2139_v29  }
 0x1cb   : > { %v506_v30 = vpop.f32.mrf.mxu2  ;;  %v2142_v31 = vpop.f32.mrf.mxu3 }
 0x1cc   : > { %714 = vperm.xlu2 %1896, %v2142_v31   ;;  %v567_v42 = vmul.f32 %v506_v30, %v506_v30 }
 0x1cd   : > { %679 = vperm.xlu0 %1895, %v500_v25  }
 0x1d3   : > { %v509_v33 = vpop.f32.mrf.mxu2  ;;  %v2147_v34 = vpop.f32.mrf.mxu3 }
 0x1d4   : > { %v573_v35 = vsub.f32 %v2147_v34, %v2145_v32  ;;  %689 = vperm.xlu2 %1896, %v506_v30   ;;  %v568_v49 = vmul.f32 %v509_v33, %v509_v33  ;;  %v572_v32 = vmul.f32 %v2142_v31, %v2142_v31  ;;  %v730_v31 = vld [vmem:[%s2490_s2 + $0x28] sm:$0xff] }
 0x1d5   : > { %694 = vperm.xlu0 %1895, %v509_v33  }
 0x1db   : > { %v512_v37 = vpop.f32.mrf.mxu2  ;;  %v544_v38 = vpop.f32.mrf.mxu3 }
 0x1dc   : > { %v574_v39 = vsub.f32 %v544_v38, %v566_v36  ;;  %699 = vperm.xlu2 %1896, %v512_v37   ;;  %v569_v61 = vmul.f32 %v512_v37, %v512_v37 }
 0x1de   : > { %v582_v40 = vmax.f32 %v574_v39, 0.0  ;;  %v571_v39 = vmul.f32 %v2139_v29, %v2139_v29 }
 0x1e0   : > { %v590_v41 = vadd.f32 1e-05, %v582_v40 }
 0x1e2   : > { %1898 = vrsqrt.f32 %v590_v41  ;;  %vm613_vm3 = vweird.f32 %v590_v41 }
 0x1e3   : > { %v547_v43 = vpop.f32.mrf.mxu3 }
 0x1e4   : > { %v575_v44 = vsub.f32 %v547_v43, %v567_v42  ;;  %v581_v43 = vmax.f32 %v573_v35, 0.0 }
 0x1e6   : > { %v583_v45 = vmax.f32 %v575_v44, 0.0 }
 0x1e8   : > { %v1899_v46 = vpop.eup %1898  ;;  %v591_v47 = vadd.f32 1e-05, %v583_v45 }
 0x1e9   : > { %v608_v48 = vmul.f32 %v1899_v46, %v590_v41  ;;  %vm614_vm2 = vweird.f32 %v1899_v46 }
 0x1ea   : > { %1900 = vrsqrt.f32 %v591_v47  ;;  %vm615_vm4 = vmor %vm613_vm3, %vm614_vm2  ;;  %vm623_vm6 = vweird.f32 %v591_v47 }
 0x1eb   : > { %v609_v50 = vmul.f32 %v1899_v46, %v608_v48  ;;  %v550_v51 = vpop.f32.mrf.mxu3 }
 0x1ec   : > { %v576_v52 = vsub.f32 %v550_v51, %v568_v49 }
 0x1ed   : > { %v610_v53 = vmul.f32 0.5, %v609_v50  ;;  %v2167_v50 = vadd.f32 1e-05, %v581_v43 }
 0x1ee   : > { %v584_v54 = vmax.f32 %v576_v52, 0.0 }
 0x1ef   : > { %v611_v55 = vsub.f32 1.5, %v610_v53  ;;  %v729_v53 = vld [vmem:[%s2490_s2 + $0x20] sm:$0xff] }
 0x1f0   : > { %v1901_v56 = vpop.eup %1900  ;;  %v592_v57 = vadd.f32 1e-05, %v584_v54 }
 0x1f1   : > { %v618_v58 = vmul.f32 %v1901_v56, %v591_v47  ;;  %v612_v59 = vmul.f32 %v1899_v46, %v611_v55  ;;  %vm624_vm5 = vweird.f32 %v1901_v56 }
 0x1f2   : > { %1902 = vrsqrt.f32 %v592_v57  ;;  %vm625_vm7 = vmor %vm623_vm6, %vm624_vm5  ;;  %vm633_vm9 = vweird.f32 %v592_v57 }
 0x1f3   : > { %v619_v62 = vmul.f32 %v1901_v56, %v618_v58  ;;  %v553_v63 = vpop.f32.mrf.mxu3  ;;  %v616_v3 = vsel %vm615_vm4, %v1899_v46, %v612_v59 }
 0x1f4   : > { %v577_v4 = vsub.f32 %v553_v63, %v569_v61  ;;  %v734_v5 = vmul.f32 %v726_v60, %v616_v3 }
 0x1f5   : > { %v620_v9 = vmul.f32 0.5, %v619_v62 }
 0x1f6   : > { %v585_v10 = vmax.f32 %v577_v4, 0.0  ;;  %748 = vperm.xlu2 %1896, %v734_v5  }
 0x1f7   : > { %v621_v11 = vsub.f32 1.5, %v620_v9 }
 0x1f8   : > { %v1903_v14 = vpop.eup %1902  ;;  %v593_v15 = vadd.f32 1e-05, %v585_v10 }
 0x1f9   : > { %v628_v16 = vmul.f32 %v1903_v14, %v592_v57  ;;  %v622_v17 = vmul.f32 %v1901_v56, %v621_v11  ;;  %vm634_vm8 = vweird.f32 %v1903_v14 }
 0x1fa   : > { %1904 = vrsqrt.f32 %v593_v15  ;;  %vm635_vm10 = vmor %vm633_vm9, %vm634_vm8  ;;  %vm643_vm12 = vweird.f32 %v593_v15 }
 0x1fb   : > { %v629_v20 = vmul.f32 %v1903_v14, %v628_v16  ;;  %v556_v21 = vpop.f32.mrf.mxu3  ;;  %v626_v23 = vsel %vm625_vm7, %v1901_v56, %v622_v17 }
 0x1fc   : > { %v578_v24 = vsub.f32 %v556_v21, %v570_v19  ;;  %v735_v25 = vmul.f32 %v727_v18, %v626_v23  ;;  %v731_v19 = vld [vmem:[%s2490_s2 + $0x30] sm:$0xff] }
 0x1fd   : > { %v630_v27 = vmul.f32 0.5, %v629_v20  ;;  %v791_v21 = vld [vmem:[%s2491_s3 + $0x10] sm:$0xff] }
 0x1fe   : > { %v586_v28 = vmax.f32 %v578_v24, 0.0  ;;  %753 = vperm.xlu0 %1895, %v735_v25  }
 0x1ff   : > { %v631_v30 = vsub.f32 1.5, %v630_v27 }
 0x200   : > { %v1905_v33 = vpop.eup %1904  ;;  %v594_v36 = vadd.f32 1e-05, %v586_v28 }
 0x201   : > { %v638_v37 = vmul.f32 %v1905_v33, %v593_v15  ;;  %v632_v38 = vmul.f32 %v1903_v14, %v631_v30  ;;  %vm644_vm11 = vweird.f32 %v1905_v33 }
 0x202   : > { %1906 = vrsqrt.f32 %v594_v36  ;;  %vm645_vm13 = vmor %vm643_vm12, %vm644_vm11  ;;  %vm653_vm15 = vweird.f32 %v594_v36 }
 0x203   : > { %v639_v40 = vmul.f32 %v1905_v33, %v638_v37  ;;  %v559_v41 = vpop.f32.mrf.mxu3  ;;  %v636_v42 = vsel %vm635_vm10, %v1903_v14, %v632_v38  ;;  %v790_v37 = vld [vmem:[%s2491_s3 + $0x8] sm:$0xff]  ;;  %vm603_vm10 = vweird.f32 %v2167_v50 }
 0x204   : > { %v579_v44 = vsub.f32 %v559_v41, %v571_v39  ;;  %v736_v45 = vmul.f32 %v728_v26, %v636_v42  ;;  %v830_v26 = vpop.permute.xlu2 %829  ;;  %v725_v42 = vld [vmem:[%s2490_s2] sm:$0xff] }
 0x205   : > { %v640_v46 = vmul.f32 0.5, %v639_v40 }
 0x206   : > { %v587_v47 = vmax.f32 %v579_v44, 0.0  ;;  %758 = vperm.xlu0 %1895, %v736_v45   ;;  %v789_v45 = vld [vmem:[%s2491_s3] sm:$0xff] }
 0x207   : > { %v641_v48 = vsub.f32 1.5, %v640_v46 }
 0x208   : > { %v1907_v49 = vpop.eup %1906  ;;  %v595_v29 = vadd.f32 1e-05, %v587_v47 }
 0x209   : > { %v648_v51 = vmul.f32 %v1907_v49, %v594_v36  ;;  %v642_v52 = vmul.f32 %v1905_v33, %v641_v48  ;;  %vm654_vm14 = vweird.f32 %v1907_v49  ;;  %v732_v36 = vld [vmem:[%s2490_s2 + $0x38] sm:$0xff]  ;;  %v835_v48 = vpop.permute.xlu0 %834 }
 0x20a   : > { %1908 = vrsqrt.f32 %v595_v29  ;;  %vm655_vm2 = vmor %vm653_vm15, %vm654_vm14  ;;  %vm663_vm4 = vweird.f32 %v595_v29 }
 0x20b   : > { %v649_v34 = vmul.f32 %v1907_v49, %v648_v51  ;;  %v562_v35 = vpop.f32.mrf.mxu3  ;;  %v646_v54 = vsel %vm645_vm13, %v1905_v33, %v642_v52  ;;  %1910 = vrsqrt.f32 %v2167_v50 }
 0x20c   : > { %v580_v55 = vsub.f32 %v562_v35, %v572_v32  ;;  %v737_v56 = vmul.f32 %v729_v53, %v646_v54  ;;  %v820_v44 = vpop.permute.xlu2 %819 }
 0x20d   : > { %v650_v57 = vmul.f32 0.5, %v649_v34 }
 0x20e   : > { %v588_v58 = vmax.f32 %v580_v55, 0.0  ;;  %763 = vperm.xlu2 %1896, %v737_v56  }
 0x20f   : > { %v651_v59 = vsub.f32 1.5, %v650_v57 }
 0x210   : > { %v1909_v60 = vpop.eup %1908  ;;  %v596_v61 = vadd.f32 1e-05, %v588_v58 }
 0x211   : > { %v658_v62 = vmul.f32 %v1909_v60, %v595_v29  ;;  %v652_v63 = vmul.f32 %v1907_v49, %v651_v59  ;;  %v1911_v3 = vpop.eup %1910  ;;  %vm664_vm3 = vweird.f32 %v1909_v60  ;;  %v825_v29 = vpop.permute.xlu0 %824 }
 0x212   : > { %1912 = vrsqrt.f32 %v596_v61  ;;  %v598_v10 = vmul.f32 %v1911_v3, %v2167_v50  ;;  %vm665_vm5 = vmor %vm663_vm4, %vm664_vm3  ;;  %vm673_vm7 = vweird.f32 %v596_v61  ;;  %vm604_vm9 = vweird.f32 %v1911_v3 }
 0x213   : > { %v659_v4 = vmul.f32 %v1909_v60, %v658_v62  ;;  %v656_v5 = vsel %vm655_vm2, %v1907_v49, %v652_v63  ;;  %vm605_vm11 = vmor %vm603_vm10, %vm604_vm9 }
 0x214   : > { %v738_v9 = vmul.f32 %v730_v31, %v656_v5  ;;  %v599_v16 = vmul.f32 %v1911_v3, %v598_v10 }
 0x215   : > { %v660_v11 = vmul.f32 0.5, %v659_v4 }
 0x216   : > { %768 = vperm.xlu0 %1895, %v738_v9   ;;  %v600_v25 = vmul.f32 0.5, %v599_v16  ;;  %v705_v46 = vpop.permute.xlu2 %704 }
 0x217   : > { %v661_v14 = vsub.f32 1.5, %v660_v11  ;;  %v722_v31 = vsub.f32 %v2022_v1, %v705_v46  ;;  %v858_v46 = vld [vmem:[%s2492_s4 + $0x68] sm:$0xff] }
 0x218   : > { %v1913_v15 = vpop.eup %1912  ;;  %v601_v30 = vsub.f32 1.5, %v600_v25 }
 0x219   : > { %v668_v17 = vmul.f32 %v1913_v15, %v596_v61  ;;  %v662_v18 = vmul.f32 %v1909_v60, %v661_v14  ;;  %vm674_vm6 = vweird.f32 %v1913_v15 }
 0x21a   : > { %vm675_vm8 = vmor %vm673_vm7, %vm674_vm6  ;;  %v602_v40 = vmul.f32 %v1911_v3, %v601_v30  ;;  %v862_v30 = vld [vmem:[%s2492_s4 + $0x88] sm:$0xff] }
 0x21b   : > { %v669_v20 = vmul.f32 %v1913_v15, %v668_v17  ;;  %v666_v23 = vsel %vm665_vm5, %v1909_v60, %v662_v18 }
 0x21c   : > { %v739_v24 = vmul.f32 %v731_v19, %v666_v23  ;;  %v606_v41 = vsel %vm605_vm11, %v1911_v3, %v602_v40  ;;  %v856_v40 = vld [vmem:[%s2492_s4 + $0x58] sm:$0xff] }
 0x21d   : > { %v670_v27 = vmul.f32 0.5, %v669_v20  ;;  %v733_v43 = vmul.f32 %v725_v42, %v606_v41  ;;  %v849_v41 = vld [vmem:[%s2492_s4 + $0x20] sm:$0xff] }
 0x21e   : > { %809 = vperm.xlu0 %1895, %v791_v21   ;;  %773 = vperm.xlu2 %1896, %v739_v24   ;;  %v815_v47 = vpop.permute.xlu2 %814  ;;  %v865_v42 = vld [vmem:[%s2492_s4 + $0xa0] sm:$0xff] }
 0x21f   : > { %v671_v28 = vsub.f32 1.5, %v670_v27  ;;  %v845_v27 = vld [vmem:[%s2492_s4] sm:$0xff] }
 0x221   : > { %v672_v33 = vmul.f32 %v1913_v15, %v671_v28  ;;  %v861_v28 = vld [vmem:[%s2492_s4 + $0x80] sm:$0xff] }
 0x223   : > { %v676_v38 = vsel %vm675_vm8, %v1913_v15, %v672_v33  ;;  %v854_v33 = vld [vmem:[%s2492_s4 + $0x48] sm:$0xff] }
 0x224   : > { %v740_v39 = vmul.f32 %v732_v36, %v676_v38  ;;  %v847_v36 = vld [vmem:[%s2492_s4 + $0x10] sm:$0xff] }
 0x225   : > { %v855_v38 = vld [vmem:[%s2492_s4 + $0x50] sm:$0xff] }
 0x226   : > { %804 = vperm.xlu0 %1895, %v790_v37   ;;  %778 = vperm.xlu2 %1896, %v740_v39   ;;  %v715_v49 = vpop.permute.xlu2 %714  ;;  %v863_v37 = vld [vmem:[%s2492_s4 + $0x90] sm:$0xff]  ;;  %v864_v39 = vld [vmem:[%s2492_s4 + $0x98] sm:$0xff] }
 0x227   : > { %v724_v56 = vsub.f32 %v2019_v0, %v715_v49  ;;  %v859_v49 = vld [vmem:[%s2492_s4 + $0x70] sm:$0xff] }
 0x22e   : > { %743 = vperm.xlu2 %1896, %v733_v43   ;;  %v690_v50 = vpop.permute.xlu2 %689  ;;  %v857_v43 = vld [vmem:[%s2492_s4 + $0x60] sm:$0xff] }
 0x22f   : > { %v719_v11 = vsub.f32 %v2040_v8, %v690_v50  ;;  %v868_v50 = vld [vmem:[%s2492_s4 + $0xb8] sm:$0xff] }
 0x236   : > { %799 = vperm.xlu2 %1896, %v789_v45   ;;  %v700_v52 = vpop.permute.xlu2 %699  ;;  %v866_v45 = vld [vmem:[%s2492_s4 + $0xa8] sm:$0xff] }
 0x237   : > { %v710_v51 = vpop.permute.xlu0 %709  ;;  %v721_v3 = vsub.f32 %v2037_v7, %v700_v52 }
 0x238   : > { %v723_v57 = vsub.f32 %v2034_v6, %v710_v51  ;;  %v860_v51 = vld [vmem:[%s2492_s4 + $0x78] sm:$0xff] }
 0x23f   : > { %v680_v53 = vpop.permute.xlu0 %679 }
 0x240   : > { %v717_v18 = vsub.f32 %v2052_v13, %v680_v53  ;;  %v846_v13 = vld [vmem:[%s2492_s4 + $0x8] sm:$0xff] }
 0x247   : > { %v695_v34 = vpop.permute.xlu0 %694 }
 0x248   : > { %v720_v0 = vsub.f32 %v2025_v2, %v695_v34  ;;  %v685_v2 = vpop.permute.xlu1 %684 }
 0x249   : > { %v718_v8 = vsub.f32 %v2049_v12, %v685_v2  ;;  %v853_v12 = vld [vmem:[%s2492_s4 + $0x40] sm:$0xff] }
 0x250   : > { %v749_v32 = vpop.permute.xlu2 %748 }
 0x251   : > { %v782_v19 = vmul.f32 %v749_v32, %v718_v8 }
 0x268   : > { %v764_v35 = vpop.permute.xlu2 %763 }
 0x269   : > { %v785_v6 = vmul.f32 %v764_v35, %v721_v3 }
 0x26b   : > { %v841_v14 = vadd.f32 %v820_v44, %v785_v6  ;;  %v850_v44 = vld [vmem:[%s2492_s4 + $0x28] sm:$0xff] }
 0x270   : > { %v754_v54 = vpop.permute.xlu0 %753 }
 0x271   : > { %v783_v1 = vmul.f32 %v754_v54, %v719_v11 }
 0x278   : > { %v774_v55 = vpop.permute.xlu2 %773  ;;  %v759_v58 = vpop.permute.xlu0 %758 }
 0x279   : > { %v787_v60 = vmul.f32 %v774_v55, %v723_v57  ;;  %v784_v9 = vmul.f32 %v759_v58, %v720_v0 }
 0x27b   : > { %v843_v63 = vadd.f32 %v830_v26, %v787_v60  ;;  %v840_v16 = vadd.f32 %v815_v47, %v784_v9  ;;  %v848_v26 = vld [vmem:[%s2492_s4 + $0x18] sm:$0xff]  ;;  %v851_v47 = vld [vmem:[%s2492_s4 + $0x30] sm:$0xff] }
 0x280   : > { %v779_v59 = vpop.permute.xlu2 %778 }
 0x281   : > { %v788_v61 = vmul.f32 %v779_v59, %v724_v56 }
 0x283   : > { %v844_v62 = vadd.f32 %v835_v48, %v788_v61  ;;  %v867_v48 = vld [vmem:[%s2492_s4 + $0xb0] sm:$0xff] }
 0x285   : > { %949 = vmatpush.msrb.mxu0 %v844_v62  ;;  %1813 = vmatpush.msrb.mxu1 %v844_v62 }
 0x286   : > { %1814 = vmatpush.msrb.mxu2 %v844_v62 }
 0x287   : > { %950 = vmatpush.msrb.mxu0 %v843_v63  ;;  %1815 = vmatpush.msrb.mxu1 %v843_v63 }
 0x288   : > { %1816 = vmatpush.msrb.mxu2 %v843_v63  ;;  %v769_v4 = vpop.permute.xlu0 %768  ;;  %v744_v15 = vpop.permute.xlu2 %743 }
 0x289   : > { %v786_v5 = vmul.f32 %v769_v4, %v722_v31  ;;  %v781_v23 = vmul.f32 %v744_v15, %v717_v18 }
 0x28b   : > { %v842_v10 = vadd.f32 %v825_v29, %v786_v5  ;;  %v852_v29 = vld [vmem:[%s2492_s4 + $0x38] sm:$0xff] }
 0x28d   : > { %951 = vmatpush.msrb.mxu0 %v842_v10  ;;  %1817 = vmatpush.msrb.mxu1 %v842_v10 }
 0x28e   : > { %1818 = vmatpush.msrb.mxu2 %v842_v10 }
 0x28f   : > { %952 = vmatpush.msrb.mxu0 %v841_v14  ;;  %1819 = vmatpush.msrb.mxu1 %v841_v14 }
 0x290   : > { %1820 = vmatpush.msrb.mxu2 %v841_v14  ;;  %v810_v7 = vpop.permute.xlu0 %809  ;;  %v800_v20 = vpop.permute.xlu2 %799 }
 0x291   : > { %v839_v17 = vadd.f32 %v810_v7, %v783_v1  ;;  %953 = vmatpush.msrb.mxu0 %v840_v16  ;;  %1821 = vmatpush.msrb.mxu1 %v840_v16  ;;  %v837_v25 = vadd.f32 %v800_v20, %v781_v23 }
 0x292   : > { %1822 = vmatpush.msrb.mxu2 %v840_v16 }
 0x293   : > { %954 = vmatpush.msrb.mxu0 %v839_v17  ;;  %1823 = vmatpush.msrb.mxu1 %v839_v17 }
 0x294   : > { %1824 = vmatpush.msrb.mxu2 %v839_v17 }
 0x298   : > { %v805_v21 = vpop.permute.xlu0 %804 }
 0x299   : > { %v838_v24 = vadd.f32 %v805_v21, %v782_v19 }
 0x29b   : > { %955 = vmatpush.msrb.mxu0 %v838_v24  ;;  %1825 = vmatpush.msrb.mxu1 %v838_v24 }
 0x29c   : > { %1826 = vmatpush.msrb.mxu2 %v838_v24 }
 0x29d   : > { %956 = vmatpush.msrb.mxu0 %v837_v25  ;;  %1827 = vmatpush.msrb.mxu1 %v837_v25 }
 0x29e   : > { %1828 = vmatpush.msrb.mxu2 %v837_v25  ;;  %1739 = vmatmul.msk.f32.vlgmr.msrb.gmra.mxu0 %vm348_vm1, %v845_v27 }
 0x29f   : > { %1755 = vmatmul.msk.f32.vlgmr.msrb.gmra.mxu2 %vm348_vm1, %v861_v28  ;;  %1747 = vmatmul.msk.f32.vlgmr.msrb.gmra.mxu1 %vm348_vm1, %v853_v12 }
 0x2a6   : > { %1740 = vmatmul.msk.f32.gmra.mxu0 %vm348_vm1, %v846_v13 }
 0x2a7   : > { %1756 = vmatmul.msk.f32.gmra.mxu2 %vm348_vm1, %v862_v30  ;;  %1748 = vmatmul.msk.f32.gmra.mxu1 %vm348_vm1, %v854_v33 }
 0x2ae   : > { %1741 = vmatmul.msk.f32.gmra.mxu0 %vm348_vm1, %v847_v36 }
 0x2af   : > { %1757 = vmatmul.msk.f32.gmra.mxu2 %vm348_vm1, %v863_v37  ;;  %1749 = vmatmul.msk.f32.gmra.mxu1 %vm348_vm1, %v855_v38 }
 0x2b6   : > { %1742 = vmatmul.msk.f32.gmra.mxu0 %vm348_vm1, %v848_v26 }
 0x2b7   : > { %1758 = vmatmul.msk.f32.gmra.mxu2 %vm348_vm1, %v864_v39  ;;  %1750 = vmatmul.msk.f32.gmra.mxu1 %vm348_vm1, %v856_v40 }
 0x2be   : > { %1743 = vmatmul.msk.f32.gmra.mxu0 %vm348_vm1, %v849_v41 }
 0x2bf   : > { %1759 = vmatmul.msk.f32.gmra.mxu2 %vm348_vm1, %v865_v42  ;;  %1751 = vmatmul.msk.f32.gmra.mxu1 %vm348_vm1, %v857_v43 }
 0x2c6   : > { %1744 = vmatmul.msk.f32.gmra.mxu0 %vm348_vm1, %v850_v44 }
 0x2c7   : > { %1760 = vmatmul.msk.f32.gmra.mxu2 %vm348_vm1, %v866_v45  ;;  %1752 = vmatmul.msk.f32.gmra.mxu1 %vm348_vm1, %v858_v46 }
 0x2ce   : > { %1745 = vmatmul.msk.f32.gmra.mxu0 %vm348_vm1, %v851_v47 }
 0x2cf   : > { %1761 = vmatmul.msk.f32.gmra.mxu2 %vm348_vm1, %v867_v48  ;;  %1753 = vmatmul.msk.f32.gmra.mxu1 %vm348_vm1, %v859_v49 }
 0x2d6   : > { %1746 = vmatmul.msk.f32.gmra.mxu0 %vm348_vm1, %v852_v29 }
 0x2d7   : > { %1762 = vmatmul.msk.f32.gmra.mxu2 %vm348_vm1, %v868_v50  ;;  %1754 = vmatmul.msk.f32.gmra.mxu1 %vm348_vm1, %v860_v51 }
 0x31b   : > { %v958_v52 = vpop.f32.mrf.mxu0 }
 0x31c   : > { %1030 = vst.msk [vmem:[#allocation2] sm:$0xff] %vm287_vm0, %v958_v52  ;;  %v982_v53 = vpop.f32.mrf.mxu1 }
 0x31d   : > { %1038 = vst.msk [vmem:[#allocation2 + $0x40] sm:$0xff] %vm287_vm0, %v982_v53 }
 0x322   : > { %v1006_v32 = vpop.f32.mrf.mxu2 }
 0x323   : > { %1046 = vst.msk [vmem:[#allocation2 + $0x80] sm:$0xff] %vm287_vm0, %v1006_v32  ;;  %v961_v34 = vpop.f32.mrf.mxu0 }
 0x324   : > { %1031 = vst.msk [vmem:[#allocation2 + $0x8] sm:$0xff] %vm287_vm0, %v961_v34  ;;  %v985_v35 = vpop.f32.mrf.mxu1 }
 0x325   : > { %1039 = vst.msk [vmem:[#allocation2 + $0x48] sm:$0xff] %vm287_vm0, %v985_v35 }
 0x32a   : > { %v1009_v54 = vpop.f32.mrf.mxu2 }
 0x32b   : > { %1047 = vst.msk [vmem:[#allocation2 + $0x88] sm:$0xff] %vm287_vm0, %v1009_v54  ;;  %v964_v55 = vpop.f32.mrf.mxu0 }
 0x32c   : > { %1032 = vst.msk [vmem:[#allocation2 + $0x10] sm:$0xff] %vm287_vm0, %v964_v55  ;;  %v988_v56 = vpop.f32.mrf.mxu1 }
 0x32d   : > { %1040 = vst.msk [vmem:[#allocation2 + $0x50] sm:$0xff] %vm287_vm0, %v988_v56 }
 0x332   : > { %v1012_v57 = vpop.f32.mrf.mxu2 }
 0x333   : > { %1048 = vst.msk [vmem:[#allocation2 + $0x90] sm:$0xff] %vm287_vm0, %v1012_v57  ;;  %v967_v58 = vpop.f32.mrf.mxu0 }
 0x334   : > { %1033 = vst.msk [vmem:[#allocation2 + $0x18] sm:$0xff] %vm287_vm0, %v967_v58  ;;  %v991_v59 = vpop.f32.mrf.mxu1 }
 0x335   : > { %1041 = vst.msk [vmem:[#allocation2 + $0x58] sm:$0xff] %vm287_vm0, %v991_v59 }
 0x33a   : > { %v1015_v60 = vpop.f32.mrf.mxu2 }
 0x33b   : > { %1049 = vst.msk [vmem:[#allocation2 + $0x98] sm:$0xff] %vm287_vm0, %v1015_v60  ;;  %v970_v61 = vpop.f32.mrf.mxu0 }
 0x33c   : > { %1034 = vst.msk [vmem:[#allocation2 + $0x20] sm:$0xff] %vm287_vm0, %v970_v61  ;;  %v994_v62 = vpop.f32.mrf.mxu1 }
 0x33d   : > { %1042 = vst.msk [vmem:[#allocation2 + $0x60] sm:$0xff] %vm287_vm0, %v994_v62 }
 0x342   : > { %v1018_v63 = vpop.f32.mrf.mxu2 }
 0x343   : > { %1050 = vst.msk [vmem:[#allocation2 + $0xa0] sm:$0xff] %vm287_vm0, %v1018_v63  ;;  %v973_v31 = vpop.f32.mrf.mxu0 }
 0x344   : > { %1035 = vst.msk [vmem:[#allocation2 + $0x28] sm:$0xff] %vm287_vm0, %v973_v31  ;;  %v997_v3 = vpop.f32.mrf.mxu1 }
 0x345   : > { %1043 = vst.msk [vmem:[#allocation2 + $0x68] sm:$0xff] %vm287_vm0, %v997_v3 }
 0x34a   : > { %v1021_v4 = vpop.f32.mrf.mxu2 }
 0x34b   : > { %1051 = vst.msk [vmem:[#allocation2 + $0xa8] sm:$0xff] %vm287_vm0, %v1021_v4  ;;  %v976_v0 = vpop.f32.mrf.mxu0 }
 0x34c   : > { %1036 = vst.msk [vmem:[#allocation2 + $0x30] sm:$0xff] %vm287_vm0, %v976_v0  ;;  %v1000_v6 = vpop.f32.mrf.mxu1 }
 0x34d   : > { %1044 = vst.msk [vmem:[#allocation2 + $0x70] sm:$0xff] %vm287_vm0, %v1000_v6 }
 0x352   : > { %v1024_v5 = vpop.f32.mrf.mxu2 }
 0x353   : > { %1052 = vst.msk [vmem:[#allocation2 + $0xb0] sm:$0xff] %vm287_vm0, %v1024_v5  ;;  %v979_v9 = vpop.f32.mrf.mxu0 }
 0x354   : > { %1037 = vst.msk [vmem:[#allocation2 + $0x38] sm:$0xff] %vm287_vm0, %v979_v9  ;;  %v1003_v10 = vpop.f32.mrf.mxu1 }
 0x355   : > { %1045 = vst.msk [vmem:[#allocation2 + $0x78] sm:$0xff] %vm287_vm0, %v1003_v10 }
 0x35a   : > { %v1027_v11 = vpop.f32.mrf.mxu2 }
 0x35b   : > { %1053 = vst.msk [vmem:[#allocation2 + $0xb8] sm:$0xff] %vm287_vm0, %v1027_v11 }
 0x35c LB: >> { %s1060_s19 = smul.u32 96, %s1951_s18  ;;  %s1779_s21 = sshll.u32 %s1951_s18, 5  ;;  %vm1240_vm6 = vcmask 130048   ;;  %s1951_s18 = sphi %s2326_s18, %s1059_s18  }
 0x35d   : >> { %s1239_s22 = scalar_lea.vmem [#allocation3], %s1779_s21  ;;  %s1059_s18 = sadd.s32 1, %s1951_s18  }
 0x35e   : >> { %s2332_s20 = scalar_lea.vmem [#allocation2], %s1060_s19  ;;  %p1056_p4 = scmp.ge.s32.totalorder %s1059_s18, 2  }
 0x35f   : > { %s2364_s23 = smov (%p1056_p4), 0  }
 0x362   : >> { %v1062_v14 = vld [vmem:[%s2332_s20] sm:$0xff]  ;;  %v1766_v1 = vld [vmem:[%s2332_s20 + $0x38] sm:$0xff]  ;;  %v1765_v16 = vld [vmem:[%s2332_s20 + $0x30] sm:$0xff] }
 0x363   : >> { %v1078_v15 = vmul.f32 0.03125, %v1062_v14  ;;  %1132 = vmatpush.msra.mxu0 %v1766_v1  ;;  %1829 = vmatpush.msra.mxu3 %v1766_v1  ;;  %v1764_v7 = vld [vmem:[%s2332_s20 + $0x28] sm:$0xff]  ;;  %v1763_v2 = vld [vmem:[%s2332_s20 + $0x20] sm:$0xff]  ;;  %v1064_v18 = vld [vmem:[%s2332_s20 + $0x10] sm:$0xff] }
 0x364   : >> { %v1063_v17 = vld [vmem:[%s2332_s20 + $0x8] sm:$0xff]  ;;  %v1080_v19 = vmul.f32 0.03125, %v1064_v18  ;;  %v1065_v20 = vld [vmem:[%s2332_s20 + $0x18] sm:$0xff]  ;;  %v1769_v62 = vld [vmem:[%s2332_s20 + $0x50] sm:$0xff] }
 0x365   : >> { %1082 = vxpose.xlu0.b32.start [1/4] (short) (narrow) %v1078_v15, 16  ;;  %1133 = vmatpush.msra.mxu0 %v1765_v16  ;;  %v1079_v8 = vmul.f32 0.03125, %v1063_v17  ;;  %v1081_v21 = vmul.f32 0.03125, %v1065_v20  ;;  %v1767_v63 = vld [vmem:[%s2332_s20 + $0x40] sm:$0xff]  ;;  %v1770_v31 = vld [vmem:[%s2332_s20 + $0x58] sm:$0xff]  ;;  %v1768_v3 = vld [vmem:[%s2332_s20 + $0x48] sm:$0xff] }
 0x366   : >> { %1830 = vmatpush.msra.mxu3 %v1765_v16 }
 0x367   : >> { %1134 = vmatpush.msra.mxu0 %v1764_v7 }
 0x368   : >> { %1831 = vmatpush.msra.mxu3 %v1764_v7 }
 0x369   : >> { %1135 = vmatpush.msra.mxu0 %v1763_v2 }
 0x36a   : >> { %1832 = vmatpush.msra.mxu3 %v1763_v2 }
 0x36d   : >> { %1083 = vxpose.xlu0.b32.cont [2/4] (short) (narrow) %v1079_v8, 16 }
 0x375   : >> { %1084 = vxpose.xlu0.b32.cont [3/4] (short) (narrow) %v1080_v19, 16 }
 0x37d   : >> { %1085 = vxpose.xlu0.b32.end [4/4] (short) (narrow) %v1081_v21, 16 }
 0x409   : >> { %v1098_v23 = vpop.trf.xlu0 }
 0x40a   : >> { %1771 = vmatmul.msk.f32.vlgmr.msra.gmra.mxu0 %vm287_vm0, %v1098_v23 }
 0x411   : >> { %v1099_v24 = vpop.trf.xlu0 }
 0x412   : >> { %1772 = vmatmul.msk.f32.vlgmr.msra.gmra.mxu3 %vm287_vm0, %v1099_v24 }
 0x487   : >> { %v1137_v28 = vpop.f32.mrf.mxu0 }
 0x488   : >> { %v1143_v12 = vsel %vm287_vm0, %v1137_v28, -inf }
 0x495   : >> { %v1140_v25 = vpop.f32.mrf.mxu3 }
 0x496   : >> { %v1146_v27 = vsel %vm287_vm0, %v1140_v25, -inf }
 0x497   : >> { %1147 = vmax.xlane.f32.xlu1 %v1146_v27 }
 0x49f   : >> { %1144 = vmax.xlane.f32.xlu1 %v1143_v12 }
 0x50a   : >> { %v1148_v13 = vpop.xlane.xlu1 %1147 }
 0x50b   : >> { %v1150_v30 = vsub.f32 %v1140_v25, %v1148_v13 }
 0x50d   : >> { %v1153_v33 = vmul.f32 1.442695, %v1150_v30 }
 0x50f   : >> { %1914 = vpow2.f32 %v1153_v33 }
 0x512   : >> { %v1145_v36 = vpop.xlane.xlu1 %1144 }
 0x513   : >> { %v1149_v37 = vsub.f32 %v1137_v28, %v1145_v36 }
 0x515   : >> { %v1915_v38 = vpop.eup %1914  ;;  %v1151_v26 = vmul.f32 1.442695, %v1149_v37 }
 0x516   : >> { %v1158_v39 = vsel %vm287_vm0, %v1915_v38, 0.0 }
 0x517   : >> { %1916 = vpow2.f32 %v1151_v26  ;;  %1159 = vadd.xlane.f32.xlu2 %v1158_v39 }
 0x51d   : >> { %v1917_v40 = vpop.eup %1916 }
 0x51e   : >> { %v1155_v41 = vsel %vm287_vm0, %v1917_v40, 0.0 }
 0x51f   : >> { %1156 = vadd.xlane.f32.xlu2 %v1155_v41 }
 0x58a   : >> { %v1160_v42 = vpop.xlane.xlu2 %1159 }
 0x58b   : >> { %1918 = vrcp.f32 %v1160_v42  ;;  %v1186_v47 = vand.u32 2147483648, %v1160_v42  ;;  %v1184_v49 = vand.u32 2147483647, %v1160_v42  ;;  %vm1180_vm13 = vweird.f32 %v1160_v42 }
 0x58d   : >> { %v1187_v51 = vor.u32 1.1754944e-38, %v1186_v47  ;;  %vm1185_vm15 = vcmp.eq.f32.partialorder %v1184_v49, 8.507059e+37 }
 0x591   : >> { %v1919_v43 = vpop.eup %1918 }
 0x592   : >> { %v1176_v44 = vmul.f32 %v1919_v43, %v1160_v42  ;;  %v1157_v45 = vpop.xlane.xlu2 %1156  ;;  %vm1181_vm12 = vweird.f32 %v1919_v43 }
 0x593   : >> { %1920 = vrcp.f32 %v1157_v45  ;;  %vm1182_vm14 = vmor %vm1180_vm13, %vm1181_vm12  ;;  %v1172_v54 = vand.u32 2147483648, %v1157_v45  ;;  %v1170_v56 = vand.u32 2147483647, %v1157_v45  ;;  %vm1166_vm3 = vweird.f32 %v1157_v45 }
 0x594   : >> { %v1177_v46 = vsub.f32 1.0, %v1176_v44 }
 0x595   : >> { %v1173_v58 = vor.u32 1.1754944e-38, %v1172_v54  ;;  %vm1171_vm5 = vcmp.eq.f32.partialorder %v1170_v56, 8.507059e+37 }
 0x596   : >> { %v1178_v48 = vmul.f32 %v1919_v43, %v1177_v46 }
 0x598   : >> { %v1179_v29 = vadd.f32 %v1919_v43, %v1178_v48 }
 0x599   : >> { %v1921_v50 = vpop.eup %1920 }
 0x59a   : >> { %v1162_v52 = vmul.f32 %v1921_v50, %v1157_v45  ;;  %v1183_v53 = vsel %vm1182_vm14, %v1919_v43, %v1179_v29  ;;  %vm1167_vm2 = vweird.f32 %v1921_v50 }
 0x59b   : >> { %v1188_v32 = vsel %vm1185_vm15, %v1187_v51, %v1183_v53  ;;  %vm1168_vm4 = vmor %vm1166_vm3, %vm1167_vm2 }
 0x59c   : >> { %v1163_v34 = vsub.f32 1.0, %v1162_v52  ;;  %v1190_v35 = vmul.f32 %v1915_v38, %v1188_v32 }
 0x59e   : >> { %v1164_v55 = vmul.f32 %v1921_v50, %v1163_v34  ;;  %1773 = vmatpush.xpose.msk.msra.mxu1 %vm287_vm0, %v1190_v35  ;;  %1833 = vmatpush.xpose.msk.msra.mxu2 %vm287_vm0, %v1190_v35 }
 0x5a0   : >> { %v1165_v57 = vadd.f32 %v1921_v50, %v1164_v55 }
 0x5a2   : >> { %v1169_v59 = vsel %vm1168_vm4, %v1921_v50, %v1165_v57 }
 0x5a3   : >> { %v1174_v60 = vsel %vm1171_vm5, %v1173_v58, %v1169_v59 }
 0x5a4   : >> { %v1189_v61 = vmul.f32 %v1917_v40, %v1174_v60 }
 0x5a6   : >> { %1774 = vmatpush.xpose.msk.msra.mxu1 %vm287_vm0, %v1189_v61  ;;  %1834 = vmatpush.xpose.msk.msra.mxu2 %vm287_vm0, %v1189_v61 }
 0x5a9   : >> { %1777 = vmatmul.msk.f32.vlgmr.msra.gmra.mxu2 %vm287_vm0, %v1769_v62  ;;  %1775 = vmatmul.msk.f32.vlgmr.msra.gmra.mxu1 %vm287_vm0, %v1767_v63 }
 0x5b1   : >> { %1778 = vmatmul.msk.f32.gmra.mxu2 %vm287_vm0, %v1770_v31  ;;  %1776 = vmatmul.msk.f32.gmra.mxu1 %vm287_vm0, %v1768_v3 }
 0x626   : >> { %v1226_v4 = vpop.f32.mrf.mxu1 }
 0x627   : >> { %1241 = vst.msk [vmem:[%s1239_s22] sm:$0xff] %vm1240_vm6, %v1226_v4 }
 0x62c   : >> { %v1232_v0 = vpop.f32.mrf.mxu2 }
 0x62d   : >> { %1243 = vst.msk [vmem:[%s1239_s22 + $0x10] sm:$0xff] %vm1240_vm6, %v1232_v0 }
 0x62e   : >> { %v1229_v6 = vpop.f32.mrf.mxu1 }
 0x62f   : >> { %1242 = vst.msk [vmem:[%s1239_s22 + $0x8] sm:$0xff] %vm1240_vm6, %v1229_v6 }
 0x631   : > { %1058 = sbr.rel (!%p1056_p4) target bundleno = 860 (0x35c), region = 100 }
 0x634   : >> { %v1235_v5 = vpop.f32.mrf.mxu2 }
 0x635   : >> { %1244 = vst.msk [vmem:[%s1239_s22 + $0x18] sm:$0xff] %vm1240_vm6, %v1235_v5 }
 0x636 LB: >> { %s1251_s25 = smul.u32 96, %s1955_s23  ;;  %s1958_s27 = smov 112   ;;  %vm1463_vm15 = vcmask 261248   ;;  %s1955_s23 = sphi %s2364_s23, %s1250_s23  }
 0x637   : >> { %s1959_s28 = smov 16   ;;  %s1796_s30 = sshll.u32 %s1955_s23, 5 }
 0x638   : >> { %s2370_s26 = scalar_lea.vmem [#allocation2], %s1251_s25  ;;  %s1462_s8 = scalar_lea.vmem [#allocation3], %s1796_s30 }
 0x639   : >> { %v1253_v9 = vld [vmem:[%s2370_s26] sm:$0xff]  ;;  %v1255_v10 = vld [vmem:[%s2370_s26 + $0x10] sm:$0xff]  ;;  %v1254_v15 = vld [vmem:[%s2370_s26 + $0x8] sm:$0xff]  ;;  %s1250_s23 = sadd.s32 1, %s1955_s23  }
 0x63a   : >> { %v1269_v11 = vmul.f32 0.03125, %v1253_v9  ;;  %v1271_v14 = vmul.f32 0.03125, %v1255_v10  ;;  %v1256_v1 = vld [vmem:[%s2370_s26 + $0x18] sm:$0xff]  ;;  %v1270_v16 = vmul.f32 0.03125, %v1254_v15  ;;  %v1782_v2 = vld [vmem:[%s2370_s26 + $0x30] sm:$0xff]  ;;  %v1781_v8 = vld [vmem:[%s2370_s26 + $0x28] sm:$0xff] }
 0x63b   : >> { %v1272_v7 = vmul.f32 0.03125, %v1256_v1  ;;  %v1783_v17 = vld [vmem:[%s2370_s26 + $0x38] sm:$0xff]  ;;  %v1780_v18 = vld [vmem:[%s2370_s26 + $0x20] sm:$0xff]  ;;  %v1786_v31 = vld [vmem:[%s2370_s26 + $0x50] sm:$0xff]  ;;  %p1247_p5 = scmp.ge.s32.totalorder %s1250_s23, 2  }
 0x63c   : >> { %1277 = vrot.lane.b32.xlu0 %v1269_v11, %s1958_s27  ;;  %1281 = vrot.lane.b32.xlu1 %v1271_v14, %s1958_s27  ;;  %v1784_v63 = vld [vmem:[%s2370_s26 + $0x40] sm:$0xff]  ;;  %v1785_v3 = vld [vmem:[%s2370_s26 + $0x48] sm:$0xff] }
 0x63d   : >> { %1339 = vmatpush.msra.mxu0 %v1783_v17  ;;  %1835 = vmatpush.msra.mxu3 %v1783_v17  ;;  %v1787_v4 = vld [vmem:[%s2370_s26 + $0x58] sm:$0xff] }
 0x63e   : > { %1931 = vset.pattern.permute.xlu1 (%p1247_p5), %v1957_v22  ;;  %1930 = vset.pattern.permute.xlu0 (%p1247_p5), %v1957_v22 }
 0x63f   : >> { %1340 = vmatpush.msra.mxu0 %v1782_v2  ;;  %1836 = vmatpush.msra.mxu3 %v1782_v2  ;;  %v1486_v2 = vld [vmem:[%s2494_s6 + $0x10] sm:$0xff] (%p1247_p5) }
 0x641   : >> { %1341 = vmatpush.msra.mxu0 %v1781_v8  ;;  %1837 = vmatpush.msra.mxu3 %v1781_v8  ;;  %v1484_v8 = vld [vmem:[%s2494_s6] sm:$0xff] (%p1247_p5) }
 0x643   : >> { %1342 = vmatpush.msra.mxu0 %v1780_v18  ;;  %1838 = vmatpush.msra.mxu3 %v1780_v18 }
 0x644   : >> { %1279 = vrot.lane.b32.xlu0 %v1270_v16, %s1958_s27  ;;  %1283 = vrot.lane.b32.xlu1 %v1272_v7, %s1958_s27 }
 0x6ae   : >> { %v1278_v19 = vpop.permute.xlu0 %1277  ;;  %v1282_v21 = vpop.permute.xlu1 %1281 }
 0x6af   : >> { %1289 = vxpose.xlu2.b32.start [1/4] (short) (narrow) %v1278_v19, 16 }
 0x6b6   : >> { %v1280_v20 = vpop.permute.xlu0 %1279  ;;  %v1284_v23 = vpop.permute.xlu1 %1283 }
 0x6b7   : >> { %1290 = vxpose.xlu2.b32.cont [2/4] (short) (narrow) %v1280_v20, 16 }
 0x6bf   : >> { %1291 = vxpose.xlu2.b32.cont [3/4] (short) (narrow) %v1282_v21, 16 }
 0x6c7   : >> { %1292 = vxpose.xlu2.b32.end [4/4] (short) (narrow) %v1284_v23, 16  ;;  %v1468_v23 = vld [vmem:[%s2493_s5] sm:$0xff] (%p1247_p5) }
 0x729   : > { %1932 = vset.pattern.permute.xlu2 (%p1247_p5), %v1957_v22  ;;  %v1491_v22 = vld [vmem:[%s2494_s6 + $0x38] sm:$0xff] (%p1247_p5) }
 0x748   : >> { %v1305_v24 = vpop.trf.xlu2 }
 0x749   : >> { %1788 = vmatmul.msk.f32.vlgmr.msra.gmra.mxu0 %vm287_vm0, %v1305_v24  ;;  %v1470_v24 = vld [vmem:[%s2493_s5 + $0x10] sm:$0xff] (%p1247_p5) }
 0x750   : >> { %v1306_v25 = vpop.trf.xlu2 }
 0x751   : >> { %1789 = vmatmul.msk.f32.vlgmr.msra.gmra.mxu3 %vm287_vm0, %v1306_v25  ;;  %v1472_v25 = vld [vmem:[%s2493_s5 + $0x20] sm:$0xff] (%p1247_p5) }
 0x7c6   : >> { %v1344_v27 = vpop.f32.mrf.mxu0 }
 0x7c7   : >> { %v1350_v28 = vsel %vm287_vm0, %v1344_v27, -inf }
 0x7c8   : >> { %1351 = vmax.xlane.f32.xlu1 %v1350_v28  ;;  %v1487_v28 = vld [vmem:[%s2494_s6 + $0x18] sm:$0xff] (%p1247_p5) }
 0x7d4   : >> { %v1347_v12 = vpop.f32.mrf.mxu3 }
 0x7d5   : >> { %v1353_v13 = vsel %vm287_vm0, %v1347_v12, -inf }
 0x7d6   : >> { %1354 = vmax.xlane.f32.xlu0 %v1353_v13  ;;  %v1488_v13 = vld [vmem:[%s2494_s6 + $0x20] sm:$0xff] (%p1247_p5) }
 0x83b   : >> { %v1352_v30 = vpop.xlane.xlu1 %1351 }
 0x83c   : >> { %v1356_v33 = vsub.f32 %v1344_v27, %v1352_v30  ;;  %v1474_v27 = vld [vmem:[%s2493_s5 + $0x30] sm:$0xff] (%p1247_p5)  ;;  %v1469_v30 = vld [vmem:[%s2493_s5 + $0x8] sm:$0xff] (%p1247_p5) }
 0x83e   : >> { %v1358_v36 = vmul.f32 1.442695, %v1356_v33  ;;  %v1471_v33 = vld [vmem:[%s2493_s5 + $0x18] sm:$0xff] (%p1247_p5) }
 0x840   : >> { %1922 = vpow2.f32 %v1358_v36  ;;  %v1473_v36 = vld [vmem:[%s2493_s5 + $0x28] sm:$0xff] (%p1247_p5) }
 0x846   : >> { %v1923_v37 = vpop.eup %1922 }
 0x847   : >> { %v1362_v38 = vsel %vm287_vm0, %v1923_v37, 0.0 }
 0x848   : >> { %1363 = vadd.xlane.f32.xlu0 %v1362_v38  ;;  %v1490_v38 = vld [vmem:[%s2494_s6 + $0x30] sm:$0xff] (%p1247_p5) }
 0x849   : >> { %v1355_v26 = vpop.xlane.xlu0 %1354 }
 0x84a   : >> { %v1357_v39 = vsub.f32 %v1347_v12, %v1355_v26  ;;  %v1485_v12 = vld [vmem:[%s2494_s6 + $0x8] sm:$0xff] (%p1247_p5) }
 0x84b   : > { %v1489_v26 = vld [vmem:[%s2494_s6 + $0x28] sm:$0xff] (%p1247_p5) }
 0x84c   : >> { %v1360_v40 = vmul.f32 1.442695, %v1357_v39 }
 0x84e   : >> { %1924 = vpow2.f32 %v1360_v40 }
 0x854   : >> { %v1925_v41 = vpop.eup %1924 }
 0x855   : >> { %v1365_v42 = vsel %vm287_vm0, %v1925_v41, 0.0 }
 0x856   : >> { %1366 = vadd.xlane.f32.xlu2 %v1365_v42 }
 0x86e   : > { %1514 = vperm.xlu2 (%p1247_p5), %1932, %v1488_v13  }
 0x876   : > { %1519 = vperm.xlu2 (%p1247_p5), %1932, %v1489_v26  }
 0x8bb   : >> { %v1364_v43 = vpop.xlane.xlu0 %1363 }
 0x8bc   : >> { %1926 = vrcp.f32 %v1364_v43  ;;  %vm1373_vm9 = vweird.f32 %v1364_v43  ;;  %v1379_v34 = vand.u32 2147483648, %v1364_v43  ;;  %v1377_v54 = vand.u32 2147483647, %v1364_v43 }
 0x8be   : >> { %v1380_v59 = vor.u32 1.1754944e-38, %v1379_v34  ;;  %vm1378_vm14 = vcmp.eq.f32.partialorder %v1377_v54, 8.507059e+37  ;;  %v1603_v34 = vld [vmem:[%s2011_s29 + $0x30] sm:$0xff] (%p1247_p5) }
 0x8c2   : >> { %v1927_v44 = vpop.eup %1926 }
 0x8c3   : >> { %v1369_v45 = vmul.f32 %v1927_v44, %v1364_v43  ;;  %vm1374_vm7 = vweird.f32 %v1927_v44  ;;  %v1597_v43 = vld [vmem:[%s2011_s29] sm:$0xff] (%p1247_p5) }
 0x8c4   : >> { %vm1375_vm11 = vmor %vm1373_vm9, %vm1374_vm7 }
 0x8c5   : >> { %v1370_v47 = vsub.f32 1.0, %v1369_v45  ;;  %v1599_v45 = vld [vmem:[%s2011_s29 + $0x10] sm:$0xff] (%p1247_p5) }
 0x8c7   : >> { %v1371_v49 = vmul.f32 %v1927_v44, %v1370_v47 }
 0x8c9   : >> { %v1367_v46 = vpop.xlane.xlu2 %1366  ;;  %v1372_v32 = vadd.f32 %v1927_v44, %v1371_v49 }
 0x8ca   : >> { %1928 = vrcp.f32 %v1367_v46  ;;  %v1393_v51 = vand.u32 2147483648, %v1367_v46  ;;  %v1391_v53 = vand.u32 2147483647, %v1367_v46  ;;  %vm1387_vm10 = vweird.f32 %v1367_v46 }
 0x8cb   : >> { %v1376_v57 = vsel %vm1375_vm11, %v1927_v44, %v1372_v32 }
 0x8cc   : >> { %v1394_v55 = vor.u32 1.1754944e-38, %v1393_v51  ;;  %vm1392_vm13 = vcmp.eq.f32.partialorder %v1391_v53, 8.507059e+37  ;;  %v1381_v61 = vsel %vm1378_vm14, %v1380_v59, %v1376_v57  ;;  %v1601_v53 = vld [vmem:[%s2011_s29 + $0x20] sm:$0xff] (%p1247_p5) }
 0x8cd   : >> { %v1396_v62 = vmul.f32 %v1923_v37, %v1381_v61  ;;  %v1475_v37 = vld [vmem:[%s2493_s5 + $0x38] sm:$0xff] (%p1247_p5) }
 0x8d0   : >> { %v1929_v48 = vpop.eup %1928 }
 0x8d1   : >> { %v1383_v29 = vmul.f32 %v1929_v48, %v1367_v46  ;;  %vm1388_vm8 = vweird.f32 %v1929_v48 }
 0x8d2   : >> { %vm1389_vm12 = vmor %vm1387_vm10, %vm1388_vm8 }
 0x8d3   : >> { %v1384_v50 = vsub.f32 1.0, %v1383_v29 }
 0x8d5   : >> { %v1385_v52 = vmul.f32 %v1929_v48, %v1384_v50  ;;  %v1515_v50 = vpop.permute.xlu2 (%p1247_p5), %1514 }
 0x8d7   : >> { %v1386_v35 = vadd.f32 %v1929_v48, %v1385_v52 }
 0x8d9   : >> { %v1390_v56 = vsel %vm1389_vm12, %v1929_v48, %v1386_v35 }
 0x8da   : >> { %v1395_v58 = vsel %vm1392_vm13, %v1394_v55, %v1390_v56  ;;  %v1598_v56 = vld [vmem:[%s2011_s29 + $0x8] sm:$0xff] (%p1247_p5) }
 0x8db   : >> { %v1397_v60 = vmul.f32 %v1925_v41, %v1395_v58  ;;  %v1600_v58 = vld [vmem:[%s2011_s29 + $0x18] sm:$0xff] (%p1247_p5) }
 0x8dd   : >> { %1790 = vmatpush.xpose.msk.msra.mxu1 %vm287_vm0, %v1397_v60  ;;  %1839 = vmatpush.xpose.msk.msra.mxu2 %vm287_vm0, %v1397_v60 }
 0x8e1   : >> { %1791 = vmatpush.xpose.msk.msra.mxu1 %vm287_vm0, %v1396_v62  ;;  %1840 = vmatpush.xpose.msk.msra.mxu2 %vm287_vm0, %v1396_v62 }
 0x8e4   : >> { %1792 = vmatmul.msk.f32.vlgmr.msra.gmra.mxu1 %vm287_vm0, %v1784_v63  ;;  %1794 = vmatmul.msk.f32.vlgmr.msra.gmra.mxu2 %vm287_vm0, %v1786_v31 }
 0x8ec   : >> { %1793 = vmatmul.msk.f32.gmra.mxu1 %vm287_vm0, %v1785_v3  ;;  %1795 = vmatmul.msk.f32.gmra.mxu2 %vm287_vm0, %v1787_v4  ;;  %v1520_v4 = vpop.permute.xlu2 (%p1247_p5), %1519 }
 0x961   : >> { %v1433_v0 = vpop.f32.mrf.mxu1 }
 0x962   : >> { %1450 = vrot.lane.b32.xlu1 %v1433_v0, %s1959_s28 }
 0x967   : >> { %v1439_v6 = vpop.f32.mrf.mxu2 }
 0x969   : >> { %v1436_v5 = vpop.f32.mrf.mxu1 }
 0x96a   : >> { %1454 = vrot.lane.b32.xlu1 %v1439_v6, %s1959_s28  ;;  %1452 = vrot.lane.b32.xlu0 %v1436_v5, %s1959_s28  ;;  %v1602_v6 = vld [vmem:[%s2011_s29 + $0x28] sm:$0xff] (%p1247_p5) }
 0x96f   : >> { %v1442_v9 = vpop.f32.mrf.mxu2 }
 0x972   : >> { %1456 = vrot.lane.b32.xlu0 %v1442_v9, %s1959_s28  ;;  %1504 = vperm.xlu1 (%p1247_p5), %1931, %v1486_v2   ;;  %v1604_v9 = vld [vmem:[%s2011_s29 + $0x38] sm:$0xff] (%p1247_p5) }
 0x97a   : > { %1494 = vperm.xlu0 (%p1247_p5), %1930, %v1484_v8   ;;  %1509 = vperm.xlu1 (%p1247_p5), %1931, %v1487_v28  }
 0x982   : > { %1499 = vperm.xlu0 (%p1247_p5), %1930, %v1485_v12   ;;  %1529 = vperm.xlu1 (%p1247_p5), %1931, %v1491_v22  }
 0x98a   : > { %1524 = vperm.xlu0 (%p1247_p5), %1930, %v1490_v38  }
 0x9d4   : >> { %v1451_v10 = vpop.permute.xlu1 %1450 }
 0x9d5   : >> { %1464 = vst.msk [vmem:[%s1462_s8] sm:$0xff] %vm1463_vm15, %v1451_v10 }
 0x9dc   : >> { %v1455_v11 = vpop.permute.xlu1 %1454  ;;  %v1453_v14 = vpop.permute.xlu0 %1452 }
 0x9dd   : >> { %1466 = vst.msk [vmem:[%s1462_s8 + $0x10] sm:$0xff] %vm1463_vm15, %v1455_v11 }
 0x9de   : >> { %1465 = vst.msk [vmem:[%s1462_s8 + $0x8] sm:$0xff] %vm1463_vm15, %v1453_v14 }
 0x9e1   : > { %1249 = sbr.rel (!%p1247_p5) target bundleno = 1590 (0x636), region = 111 }
 0x9e4   : >> { %v1457_v15 = vpop.permute.xlu0 %1456  ;;  %v1505_v40 = vpop.permute.xlu1 (%p1247_p5), %1504 }
 0x9e5   : >> { %1467 = vst.msk [vmem:[%s1462_s8 + $0x18] sm:$0xff] %vm1463_vm15, %v1457_v15 }
 0x9ec   : > { %v1483_v1 = vld [vmem:[#allocation3 + $0x38] sm:$0xff]  ;;  %v1482_v16 = vld [vmem:[#allocation3 + $0x30] sm:$0xff]  ;;  %v1481_v7 = vld [vmem:[#allocation3 + $0x28] sm:$0xff]  ;;  %v1495_v39 = vpop.permute.xlu0 %1494  ;;  %v1510_v29 = vpop.permute.xlu1 %1509 }
 0x9ed   : > { %1564 = vmatpush.msra.mxu0 %v1483_v1  ;;  %1841 = vmatpush.msra.mxu1 %v1483_v1  ;;  %v1480_v17 = vld [vmem:[#allocation3 + $0x20] sm:$0xff]  ;;  %v1479_v18 = vld [vmem:[#allocation3 + $0x18] sm:$0xff]  ;;  %v1478_v19 = vld [vmem:[#allocation3 + $0x10] sm:$0xff] }
 0x9ee   : > { %1842 = vmatpush.msra.mxu2 %v1483_v1  ;;  %1843 = vmatpush.msra.mxu3 %v1483_v1  ;;  %v1477_v20 = vld [vmem:[#allocation3 + $0x8] sm:$0xff]  ;;  %v1476_v21 = vld [vmem:[#allocation3] sm:$0xff] }
 0x9ef   : > { %1565 = vmatpush.msra.mxu0 %v1482_v16  ;;  %1844 = vmatpush.msra.mxu1 %v1482_v16 }
 0x9f0   : > { %1845 = vmatpush.msra.mxu2 %v1482_v16  ;;  %1846 = vmatpush.msra.mxu3 %v1482_v16 }
 0x9f1   : > { %1566 = vmatpush.msra.mxu0 %v1481_v7  ;;  %1847 = vmatpush.msra.mxu1 %v1481_v7 }
 0x9f2   : > { %1848 = vmatpush.msra.mxu2 %v1481_v7  ;;  %1849 = vmatpush.msra.mxu3 %v1481_v7 }
 0x9f3   : > { %1567 = vmatpush.msra.mxu0 %v1480_v17  ;;  %1850 = vmatpush.msra.mxu1 %v1480_v17 }
 0x9f4   : > { %1851 = vmatpush.msra.mxu2 %v1480_v17  ;;  %1852 = vmatpush.msra.mxu3 %v1480_v17  ;;  %v1500_v41 = vpop.permute.xlu0 %1499  ;;  %v1530_v3 = vpop.permute.xlu1 %1529 }
 0x9f5   : > { %1568 = vmatpush.msra.mxu0 %v1479_v18  ;;  %1853 = vmatpush.msra.mxu1 %v1479_v18 }
 0x9f6   : > { %1854 = vmatpush.msra.mxu2 %v1479_v18  ;;  %1855 = vmatpush.msra.mxu3 %v1479_v18 }
 0x9f7   : > { %1569 = vmatpush.msra.mxu0 %v1478_v19  ;;  %1856 = vmatpush.msra.mxu1 %v1478_v19 }
 0x9f8   : > { %1857 = vmatpush.msra.mxu2 %v1478_v19  ;;  %1858 = vmatpush.msra.mxu3 %v1478_v19 }
 0x9f9   : > { %1570 = vmatpush.msra.mxu0 %v1477_v20  ;;  %1859 = vmatpush.msra.mxu1 %v1477_v20 }
 0x9fa   : > { %1860 = vmatpush.msra.mxu2 %v1477_v20  ;;  %1861 = vmatpush.msra.mxu3 %v1477_v20 }
 0x9fb   : > { %1571 = vmatpush.msra.mxu0 %v1476_v21  ;;  %1862 = vmatpush.msra.mxu1 %v1476_v21 }
 0x9fc   : > { %1863 = vmatpush.msra.mxu2 %v1476_v21  ;;  %1864 = vmatpush.msra.mxu3 %v1476_v21  ;;  %v1525_v51 = vpop.permute.xlu0 %1524 }
 0x9fd   : > { %1797 = vmatmul.msk.f32.vlgmr.msra.gmra.mxu0 %vm348_vm1, %v1468_v23  ;;  %1799 = vmatmul.msk.f32.vlgmr.msra.gmra.mxu1 %vm348_vm1, %v1470_v24 }
 0x9fe   : > { %1801 = vmatmul.msk.f32.vlgmr.msra.gmra.mxu2 %vm348_vm1, %v1472_v25  ;;  %1803 = vmatmul.msk.f32.vlgmr.msra.gmra.mxu3 %vm348_vm1, %v1474_v27 }
 0xa05   : > { %1798 = vmatmul.msk.f32.gmra.mxu0 %vm348_vm1, %v1469_v30  ;;  %1800 = vmatmul.msk.f32.gmra.mxu1 %vm348_vm1, %v1471_v33 }
 0xa06   : > { %1802 = vmatmul.msk.f32.gmra.mxu2 %vm348_vm1, %v1473_v36  ;;  %1804 = vmatmul.msk.f32.gmra.mxu3 %vm348_vm1, %v1475_v37 }
 0xa7a   : > { %v1573_v42 = vpop.f32.mrf.mxu0  ;;  %v1579_v44 = vpop.f32.mrf.mxu1 }
 0xa7b   : > { %v1574_v46 = vadd.f32 %v1573_v42, %v1495_v39  ;;  %v1580_v47 = vadd.f32 %v1579_v44, %v1505_v40 }
 0xa7d   : > { %v1605_v48 = vadd.f32 %v1597_v43, %v1574_v46  ;;  %v1607_v49 = vadd.f32 %v1599_v45, %v1580_v47 }
 0xa7f   : > { %1613 = vst.msk [vmem:[%s2016_s9] sm:$0xff] %vm287_vm0, %v1605_v48 }
 0xa80   : > { %1615 = vst.msk [vmem:[%s2016_s9 + $0x10] sm:$0xff] %vm287_vm0, %v1607_v49 }
 0xa81   : > { %v1585_v52 = vpop.f32.mrf.mxu2  ;;  %v1591_v32 = vpop.f32.mrf.mxu3 }
 0xa82   : > { %v1586_v35 = vadd.f32 %v1585_v52, %v1515_v50  ;;  %v1592_v54 = vadd.f32 %v1591_v32, %v1525_v51  ;;  %v1576_v55 = vpop.f32.mrf.mxu0  ;;  %v1582_v57 = vpop.f32.mrf.mxu1 }
 0xa83   : > { %v1577_v59 = vadd.f32 %v1576_v55, %v1500_v41  ;;  %v1583_v60 = vadd.f32 %v1582_v57, %v1510_v29 }
 0xa84   : > { %v1609_v61 = vadd.f32 %v1601_v53, %v1586_v35  ;;  %v1611_v62 = vadd.f32 %v1603_v34, %v1592_v54 }
 0xa85   : > { %v1606_v63 = vadd.f32 %v1598_v56, %v1577_v59  ;;  %v1608_v31 = vadd.f32 %v1600_v58, %v1583_v60 }
 0xa86   : > { %1617 = vst.msk [vmem:[%s2016_s9 + $0x20] sm:$0xff] %vm287_vm0, %v1609_v61 }
 0xa87   : > { %1619 = vst.msk [vmem:[%s2016_s9 + $0x30] sm:$0xff] %vm287_vm0, %v1611_v62 }
 0xa88   : > { %1614 = vst.msk [vmem:[%s2016_s9 + $0x8] sm:$0xff] %vm287_vm0, %v1606_v63 }
 0xa89   : > { %1616 = vst.msk [vmem:[%s2016_s9 + $0x18] sm:$0xff] %vm287_vm0, %v1608_v31  ;;  %v1588_v0 = vpop.f32.mrf.mxu2  ;;  %v1594_v5 = vpop.f32.mrf.mxu3 }
 0xa8a   : > { %v1589_v10 = vadd.f32 %v1588_v0, %v1520_v4  ;;  %v1595_v11 = vadd.f32 %v1594_v5, %v1530_v3 }
 0xa8c   : > { %v1610_v14 = vadd.f32 %v1602_v6, %v1589_v10  ;;  %v1612_v15 = vadd.f32 %v1604_v9, %v1595_v11 }
 0xa8e   : > { %1618 = vst.msk [vmem:[%s2016_s9 + $0x28] sm:$0xff] %vm287_vm0, %v1610_v14 }
 0xa8f   : > { %1620 = vst.msk [vmem:[%s2016_s9 + $0x38] sm:$0xff] %vm287_vm0, %v1612_v15 }
 0xa90 PF: > { %s17_s24 = sadd.s32 1, %s1947_s24  }
 0xa91   : > { %p14_p6 = scmp.ge.s32.totalorder %s17_s24, 4  }
 0xa93   :  { %16 = sbr.rel (!%p14_p6) target bundleno = 1 (0x1), region = 122 }

</bundles_post_ra>
